<compile_context>
chip_gen: v7x
topology: tpu7x:2x2x1
jax: 0.10.0
libtpu: 0.0.40
codegen_flags: <defaults>
</compile_context>

<pallas_src>
import jax
import jax.numpy as jnp
from jax.experimental import pallas as pl
from jax.experimental.pallas import tpu as pltpu


def _leaky_relu(x, slope=0.2):
    # One vmax per vreg instead of compare+select.
    return jnp.maximum(x, slope * x)


def discriminator_kernel(x_ref,
                         w1_ref, b1_ref,
                         w2_ref, b2_ref,
                         w3_ref, b3_ref,
                         w4t_ref, b4_ref,
                         o_ref):
    # x and all weights arrive as bf16; matmuls are bf16 x bf16 on the MXU with
    # f32 accumulation. Bias add + LeakyReLU happen in f32, then activations
    # are rounded back to bf16 for the next matmul operand.
    x = x_ref[...]                                      # (tb, 80) bf16

    h = jnp.dot(x, w1_ref[...], preferred_element_type=jnp.float32) + b1_ref[...]
    h = _leaky_relu(h).astype(jnp.bfloat16)             # (tb, 1024)

    h = jnp.dot(h, w2_ref[...], preferred_element_type=jnp.float32) + b2_ref[...]
    h = _leaky_relu(h).astype(jnp.bfloat16)             # (tb, 512)

    h = jnp.dot(h, w3_ref[...], preferred_element_type=jnp.float32) + b3_ref[...]
    h = _leaky_relu(h)                                  # (tb, 256) f32

    # Final layer (out_features == 1): VPU multiply + cross-lane reduce instead
    # of a mostly-padded N=1 MXU matmul. w4 is pre-transposed to [1, 256];
    # upcasting this single row is negligible.
    z = jnp.sum(h * w4t_ref[...].astype(jnp.float32), axis=-1, keepdims=True)
    z = z + b4_ref[...]

    # Exact sigmoid; the (tb, 1) tile is tiny so the precise divide is free.
    o_ref[...] = (1.0 / (1.0 + jnp.exp(-z))).astype(o_ref.dtype)


def prepare_params(params):
    """One-time conversion of f32 PyTorch-style ([in, out]) params into the
    kernel-ready layout: bf16 weights (w1 left unpadded at [80, 1024]), w4
    pre-transposed to [1, 256], f32 biases. Call once, outside the hot path."""
    return {
        "w1": params["w1"].astype(jnp.bfloat16), "b1": params["b1"],
        "w2": params["w2"].astype(jnp.bfloat16), "b2": params["b2"],
        "w3": params["w3"].astype(jnp.bfloat16), "b3": params["b3"],
        "w4t": params["w4"].T.astype(jnp.bfloat16), "b4": params["b4"],
    }


def _pick_tb(B, tb_max):
    # Prefer a tile that yields >= 4 grid steps (>= 2 per TensorCore on v7x
    # megacore) while filling the 256-row MXU on v6e/v7x for big batches.
    for t in (tb_max, 128):
        if B >= 4 * t:
            return t
    return 128


def dcgan_discriminator(x, prepped, *, tb=256):
    """x: [B, input_dim] (any float dtype). prepped: output of prepare_params."""
    B, in_dim = x.shape
    assert in_dim == prepped["w1"].shape[0], (in_dim, prepped["w1"].shape)

    # bf16 input halves x HBM->VMEM traffic; accuracy already bounded by bf16 weights.
    x = x.astype(jnp.bfloat16)

    args_w = (prepped["w1"], prepped["b1"],
              prepped["w2"], prepped["b2"],
              prepped["w3"], prepped["b3"],
              prepped["w4t"], prepped["b4"])

    if B <= tb:
        # Small batch: single invocation, everything resident in VMEM.
        args = (x,) + args_w
        full = lambda a: pl.BlockSpec(a.shape, lambda: (0,) * a.ndim)
        return pl.pallas_call(
            discriminator_kernel,
            out_shape=jax.ShapeDtypeStruct((B, 1), jnp.float32),
            in_specs=[full(a) for a in args],
            out_specs=pl.BlockSpec((B, 1), lambda: (0, 0)),
            compiler_params=pltpu.CompilerParams(vmem_limit_bytes=16 << 20),
        )(*args)

    # Large batch: always tile the batch axis (pad B up to a multiple of tb so
    # there is no full-resident fallback that could VMEM-OOM for awkward B).
    tb = _pick_tb(B, tb)
    B_pad = pl.cdiv(B, tb) * tb
    if B_pad != B:
        x = jnp.pad(x, ((0, B_pad - B), (0, 0)))
    args = (x,) + args_w

    # Weights/biases use constant index_maps: DMA'd once, VMEM-resident across
    # grid steps; the parallel batch axis can shard across TensorCores.
    resident = lambda a: pl.BlockSpec(a.shape, lambda i: (0,) * a.ndim)
    out = pl.pallas_call(
        discriminator_kernel,
        out_shape=jax.ShapeDtypeStruct((B_pad, 1), jnp.float32),
        grid=(B_pad // tb,),
        in_specs=[pl.BlockSpec((tb, in_dim), lambda i: (i, 0))]
                 + [resident(a) for a in args_w],
        out_specs=pl.BlockSpec((tb, 1), lambda i: (i, 0)),
        compiler_params=pltpu.CompilerParams(
            dimension_semantics=("parallel",),
            vmem_limit_bytes=16 << 20,
        ),
    )(*args)
    return out[:B] if B_pad != B else out


def init_params(key, input_dim=80):
    """Deterministic init mimicking nn.Linear's U(-1/sqrt(fan_in), 1/sqrt(fan_in))."""
    dims = [(input_dim, 1024), (1024, 512), (512, 256), (256, 1)]
    params = {}
    keys = jax.random.split(key, 2 * len(dims))
    for i, (fan_in, fan_out) in enumerate(dims):
        bound = 1.0 / (fan_in ** 0.5)
        params[f"w{i + 1}"] = jax.random.uniform(
            keys[2 * i], (fan_in, fan_out),
            minval=-bound, maxval=bound, dtype=jnp.float32)
        params[f"b{i + 1}"] = jax.random.uniform(
            keys[2 * i + 1], (1, fan_out),
            minval=-bound, maxval=bound, dtype=jnp.float32)
    return params


def reference_forward(x, params):
    """f32 reference that applies the same bf16 rounding the kernel sees
    (bf16 x, bf16 weights, f32 accumulation, bf16 activations between layers)."""
    q = lambda a: a.astype(jnp.bfloat16).astype(jnp.float32)
    h = q(x)
    for i in (1, 2, 3):
        h = jnp.dot(h, q(params[f"w{i}"]), precision="highest") + params[f"b{i}"]
        h = jnp.where(h > 0, h, 0.2 * h)
        if i < 3:
            h = q(h)
    z = jnp.dot(h, q(params["w4"]), precision="highest") + params["b4"]
    return jax.nn.sigmoid(z)


if __name__ == "__main__":
    key = jax.random.PRNGKey(0)
    k_param, k_x1, k_x2, k_x3 = jax.random.split(key, 4)

    input_dim = 80
    params = init_params(k_param, input_dim=input_dim)
    prepped = prepare_params(params)

    # Small batch: fully fused single invocation (no grid).
    x_small = jax.random.normal(k_x1, (8, input_dim), dtype=jnp.float32)
    out_small = jax.block_until_ready(dcgan_discriminator(x_small, prepped))
    ref_small = reference_forward(x_small, params)
    assert out_small.shape == (8, 1), out_small.shape
    assert jnp.allclose(out_small, ref_small, atol=2e-2, rtol=2e-2)

    # Larger batch: batch-tiled grid (512 -> 4 steps of 128, >=2 per v7x core).
    x_big = jax.random.normal(k_x2, (512, input_dim), dtype=jnp.float32)
    out_big = jax.block_until_ready(dcgan_discriminator(x_big, prepped))
    ref_big = reference_forward(x_big, params)
    assert out_big.shape == (512, 1), out_big.shape
    assert jnp.allclose(out_big, ref_big, atol=2e-2, rtol=2e-2)

    # Awkward batch: grid path with batch padding (no full-resident fallback).
    x_odd = jax.random.normal(k_x3, (300, input_dim), dtype=jnp.float32)
    out_odd = jax.block_until_ready(dcgan_discriminator(x_odd, prepped))
    ref_odd = reference_forward(x_odd, params)
    assert out_odd.shape == (300, 1), out_odd.shape
    assert jnp.allclose(out_odd, ref_odd, atol=2e-2, rtol=2e-2)

    print("KERNEL_OK")
</pallas_src>

<mosaic_0001>
module attributes {stable_mosaic.version = 11 : i64} {
  func.func @discriminator_kernel(%arg0: memref<8x80xbf16, #tpu.memory_space<vmem>>, %arg1: memref<80x1024xbf16, #tpu.memory_space<vmem>>, %arg2: memref<1x1024xf32, #tpu.memory_space<vmem>>, %arg3: memref<1024x512xbf16, #tpu.memory_space<vmem>>, %arg4: memref<1x512xf32, #tpu.memory_space<vmem>>, %arg5: memref<512x256xbf16, #tpu.memory_space<vmem>>, %arg6: memref<1x256xf32, #tpu.memory_space<vmem>>, %arg7: memref<1x256xbf16, #tpu.memory_space<vmem>>, %arg8: memref<1x1xf32, #tpu.memory_space<vmem>>, %arg9: memref<8x1xf32, #tpu.memory_space<vmem>>) attributes {dimension_semantics = [], scalar_prefetch = 0 : i64, scratch_operands = 0 : i64, tpu.core_type = #tpu.core_type<tc>} {
    %c0 = arith.constant 0 : index
    %c0_0 = arith.constant 0 : index
    %0 = vector.load %arg0[%c0, %c0_0] : memref<8x80xbf16, #tpu.memory_space<vmem>>, vector<8x80xbf16>
    %c0_1 = arith.constant 0 : index
    %c0_2 = arith.constant 0 : index
    %1 = vector.load %arg1[%c0_1, %c0_2] : memref<80x1024xbf16, #tpu.memory_space<vmem>>, vector<80x1024xbf16>
    %cst = arith.constant dense<0.000000e+00> : vector<8x1024xf32>
    %2 = tpu.matmul %0, %1, %cst {dimension_numbers = #tpu.dot_dimension_numbers<[1], [0], [0], [1], [0, 0, 1, 1], [], []>} : vector<8x80xbf16>, vector<80x1024xbf16>, vector<8x1024xf32> -> vector<8x1024xf32>
    %c0_3 = arith.constant 0 : index
    %c0_4 = arith.constant 0 : index
    %3 = vector.load %arg2[%c0_3, %c0_4] : memref<1x1024xf32, #tpu.memory_space<vmem>>, vector<1x1024xf32>
    %4 = vector.broadcast %3 : vector<1x1024xf32> to vector<8x1024xf32>
    %5 = arith.addf %2, %4 : vector<8x1024xf32>
    %cst_5 = arith.constant 2.000000e-01 : f32
    %6 = vector.broadcast %cst_5 : f32 to vector<8x1024xf32>
    %7 = arith.mulf %6, %5 : vector<8x1024xf32>
    %8 = arith.maximumf %5, %7 : vector<8x1024xf32>
    %9 = arith.truncf %8 : vector<8x1024xf32> to vector<8x1024xbf16>
    %c0_6 = arith.constant 0 : index
    %c0_7 = arith.constant 0 : index
    %10 = vector.load %arg3[%c0_6, %c0_7] : memref<1024x512xbf16, #tpu.memory_space<vmem>>, vector<1024x512xbf16>
    %cst_8 = arith.constant dense<0.000000e+00> : vector<8x512xf32>
    %11 = tpu.matmul %9, %10, %cst_8 {dimension_numbers = #tpu.dot_dimension_numbers<[1], [0], [0], [1], [0, 0, 1, 1], [], []>} : vector<8x1024xbf16>, vector<1024x512xbf16>, vector<8x512xf32> -> vector<8x512xf32>
    %c0_9 = arith.constant 0 : index
    %c0_10 = arith.constant 0 : index
    %12 = vector.load %arg4[%c0_9, %c0_10] : memref<1x512xf32, #tpu.memory_space<vmem>>, vector<1x512xf32>
    %13 = vector.broadcast %12 : vector<1x512xf32> to vector<8x512xf32>
    %14 = arith.addf %11, %13 : vector<8x512xf32>
    %cst_11 = arith.constant 2.000000e-01 : f32
    %15 = vector.broadcast %cst_11 : f32 to vector<8x512xf32>
    %16 = arith.mulf %15, %14 : vector<8x512xf32>
    %17 = arith.maximumf %14, %16 : vector<8x512xf32>
    %18 = arith.truncf %17 : vector<8x512xf32> to vector<8x512xbf16>
    %c0_12 = arith.constant 0 : index
    %c0_13 = arith.constant 0 : index
    %19 = vector.load %arg5[%c0_12, %c0_13] : memref<512x256xbf16, #tpu.memory_space<vmem>>, vector<512x256xbf16>
    %cst_14 = arith.constant dense<0.000000e+00> : vector<8x256xf32>
    %20 = tpu.matmul %18, %19, %cst_14 {dimension_numbers = #tpu.dot_dimension_numbers<[1], [0], [0], [1], [0, 0, 1, 1], [], []>} : vector<8x512xbf16>, vector<512x256xbf16>, vector<8x256xf32> -> vector<8x256xf32>
    %c0_15 = arith.constant 0 : index
    %c0_16 = arith.constant 0 : index
    %21 = vector.load %arg6[%c0_15, %c0_16] : memref<1x256xf32, #tpu.memory_space<vmem>>, vector<1x256xf32>
    %22 = vector.broadcast %21 : vector<1x256xf32> to vector<8x256xf32>
    %23 = arith.addf %20, %22 : vector<8x256xf32>
    %cst_17 = arith.constant 2.000000e-01 : f32
    %24 = vector.broadcast %cst_17 : f32 to vector<8x256xf32>
    %25 = arith.mulf %24, %23 : vector<8x256xf32>
    %26 = arith.maximumf %23, %25 : vector<8x256xf32>
    %c0_18 = arith.constant 0 : index
    %c0_19 = arith.constant 0 : index
    %27 = vector.load %arg7[%c0_18, %c0_19] : memref<1x256xbf16, #tpu.memory_space<vmem>>, vector<1x256xbf16>
    %28 = arith.extf %27 : vector<1x256xbf16> to vector<1x256xf32>
    %29 = vector.broadcast %28 : vector<1x256xf32> to vector<8x256xf32>
    %30 = arith.mulf %26, %29 : vector<8x256xf32>
    %cst_20 = arith.constant dense<0.000000e+00> : vector<8xf32>
    %31 = vector.multi_reduction <add>, %30, %cst_20 [1] : vector<8x256xf32> to vector<8xf32>
    %32 = vector.shape_cast %31 : vector<8xf32> to vector<8x1xf32>
    %c0_21 = arith.constant 0 : index
    %c0_22 = arith.constant 0 : index
    %33 = vector.load %arg8[%c0_21, %c0_22] : memref<1x1xf32, #tpu.memory_space<vmem>>, vector<1x1xf32>
    %34 = vector.broadcast %33 : vector<1x1xf32> to vector<8x1xf32>
    %35 = arith.addf %32, %34 : vector<8x1xf32>
    %cst_23 = arith.constant 0.000000e+00 : f32
    %36 = vector.broadcast %cst_23 : f32 to vector<8x1xf32>
    %37 = arith.subf %36, %35 : vector<8x1xf32>
    %38 = math.exp %37 : vector<8x1xf32>
    %cst_24 = arith.constant 1.000000e+00 : f32
    %39 = vector.broadcast %cst_24 : f32 to vector<8x1xf32>
    %40 = arith.addf %39, %38 : vector<8x1xf32>
    %cst_25 = arith.constant 1.000000e+00 : f32
    %41 = vector.broadcast %cst_25 : f32 to vector<8x1xf32>
    %42 = arith.divf %41, %40 : vector<8x1xf32>
    %c0_26 = arith.constant 0 : index
    %c0_27 = arith.constant 0 : index
    %43 = vector.load %arg9[%c0_26, %c0_27] : memref<8x1xf32, #tpu.memory_space<vmem>>, vector<8x1xf32>
    tpu.vector_store %arg9[%c0_26, %c0_27], %42 {strides = array<i32>} : memref<8x1xf32, #tpu.memory_space<vmem>>, vector<8x1xf32>,
    return
  }
}

</mosaic_0001>

<bundles_post_ra>
// kernel: tpu_custom_call.1
= control target key start
LH: loop header
LB: loop body
LE: loop exit
PB: predicated region body
PF: predicated region fallthrough
CT: control target
= control target key end

     0   :  { %s4204_s0 = inlined_call_operand.hbm [shape: bf16[8,80], index: 0, kind: input, shape index: {}]   ;;  %s4205_s1 = inlined_call_operand.hbm [shape: bf16[80,1024], index: 1, kind: input, shape index: {}]   ;;  %s4206_s2 = inlined_call_operand.vmem [shape: f32[1,1024], index: 2, kind: input, shape index: {}]   ;;  %s4207_s3 = inlined_call_operand.hbm [shape: bf16[1024,512], index: 3, kind: input, shape index: {}]   ;;  %s4208_s4 = inlined_call_operand.vmem [shape: f32[1,512], index: 4, kind: input, shape index: {}]   ;;  %s4209_s5 = inlined_call_operand.hbm [shape: bf16[512,256], index: 5, kind: input, shape index: {}]   ;;  %s4210_s6 = inlined_call_operand.vmem [shape: f32[1,256], index: 6, kind: input, shape index: {}]   ;;  %s4211_s7 = inlined_call_operand.vmem [shape: bf16[1,256], index: 7, kind: input, shape index: {}]   ;;  %s4212_s8 = inlined_call_operand.<no memory space> [shape: f32[1,1], index: 8, kind: input, shape index: {}]   ;;  %s4213_s9 = inlined_call_operand.vmem [shape: f32[8,1], index: 9, kind: output, shape index: {}]  }
   0x1   :  { %v14_v0 = vstv %s4212_s8 }
   0x2   :  { %15 = vst [vmem:[#allocation2] sm:$0x1] %v14_v0 }
   0x3   :  { %16 = vsyncpa [#allocation4], 0 }
   0x4   :  { %17 = vsyncpa [#allocation6], 0 }
   0x5   :  { %18 = vsyncpa [#allocation9], 0  ;;  %s3978_s11 = smov [#allocation5]   ;;  %s3884_s15 = scalar_lea.hbm %s4205_s1, 5120 }
   0x6   :  { %s34_s12 = sshll.u32 %s3978_s11, 4  ;;  %p3885_p0 = scmp.ne.s32.totalorder %s4205_s1, %s3884_s15  ;;  %s35_s12 = int_to_ptr.vmem [resolvable:$true] %s34_s12 }
   0x7   :  { %p3888_p1 = scmp.lt.u32.totalorder %s3884_s15, %s4205_s1 }
   0x9   :  { %p3890_p2 = pnand %p3888_p1, %p3885_p0 }
   0xb   :  { %3893 = shalt.err (!%p3890_p2)
}
   0xc   :  { %s3894_s8 = scalar_lea.vmem %s35_s12, 5120  ;;  %p3899_p4 = scmp.lt.s32.totalorder %s35_s12, %s35_s12 }
   0xd   :  { %p3895_p3 = scmp.ne.s32.totalorder %s35_s12, %s3894_s8  ;;  %p3900_p5 = scmp.lt.s32.totalorder %s3894_s8, %s3894_s8 }
   0xf   :  { %p3901_p6 = por %p3900_p5, %p3899_p4 }
  0x11   :  { %p3902_p7 = pnand %p3901_p6, %p3895_p3 }
  0x13   :  { %3905 = shalt.err (!%p3902_p7)
}
  0x14   :  { %s3979_s20 = smov 512   ;;  %s3980_s21 = smov 32  }
  0x15   :  { %40 = dma.hbm_to_vmem [thread:$0]  %s4205_s1, 5120, %s35_s12, [#allocation6], %s3979_s20, %s3979_s20, %s3980_s21  }
  0x16   :  { %s3981_s24 = smov [#allocation3]   ;;  %s3982_s26 = smov [#allocation7]  }
  0x17   :  { %s25_s25 = sshll.u32 %s3981_s24, 4  ;;  %s48_s27 = sshll.u32 %s3982_s26, 4  ;;  %s26_s25 = int_to_ptr.vmem [resolvable:$true] %s25_s25  ;;  %s49_s27 = int_to_ptr.vmem [resolvable:$true] %s48_s27 }
  0x18   :  { %s3906_s30 = scalar_lea.hbm %s4204_s0, 64 }
  0x19   :  { %p3907_p8 = scmp.ne.s32.totalorder %s4204_s0, %s3906_s30  ;;  %p3910_p9 = scmp.lt.u32.totalorder %s3906_s30, %s4204_s0 }
  0x1b   :  { %p3912_p10 = pnand %p3910_p9, %p3907_p8 }
  0x1d   :  { %3915 = shalt.err (!%p3912_p10)
}
  0x1e   :  { %s3916_s1 = scalar_lea.vmem %s26_s25, 64  ;;  %p3921_p12 = scmp.lt.s32.totalorder %s26_s25, %s26_s25 }
  0x1f   :  { %p3917_p11 = scmp.ne.s32.totalorder %s26_s25, %s3916_s1  ;;  %p3922_p13 = scmp.lt.s32.totalorder %s3916_s1, %s3916_s1 }
  0x21   :  { %p3923_p0 = por %p3922_p13, %p3921_p12 }
  0x23   :  { %p3924_p1 = pnand %p3923_p0, %p3917_p11 }
  0x25   :  { %3927 = shalt.err (!%p3924_p1)
}
  0x26   :  { %28 = dma.hbm_to_vmem [thread:$0]  %s4204_s0, 64, %s26_s25, [#allocation4]  }
  0x27   :  { %s3928_s18 = scalar_lea.hbm %s4207_s3, 32768 }
  0x28   :  { %p3929_p2 = scmp.ne.s32.totalorder %s4207_s3, %s3928_s18  ;;  %p3932_p3 = scmp.lt.u32.totalorder %s3928_s18, %s4207_s3 }
  0x2a   :  { %p3934_p4 = pnand %p3932_p3, %p3929_p2 }
  0x2c   :  { %3937 = shalt.err (!%p3934_p4)
}
  0x2d   :  { %s3938_s22 = scalar_lea.vmem %s49_s27, 32768  ;;  %p3943_p6 = scmp.lt.s32.totalorder %s49_s27, %s49_s27 }
  0x2e   :  { %p3939_p5 = scmp.ne.s32.totalorder %s49_s27, %s3938_s22  ;;  %p3944_p7 = scmp.lt.s32.totalorder %s3938_s22, %s3938_s22 }
  0x30   :  { %p3945_p8 = por %p3944_p7, %p3943_p6 }
  0x32   :  { %p3946_p9 = pnand %p3945_p8, %p3939_p5 }
  0x34   :  { %3949 = shalt.err (!%p3946_p9)
}
  0x35   :  { %s3983_s0 = smov 256   ;;  %s3984_s23 = smov 16  }
  0x36   :  { %54 = dma.hbm_to_vmem [thread:$0]  %s4207_s3, 32768, %s49_s27, [#allocation6], %s3983_s0, %s3983_s0, %s3984_s23  }
  0x37   :  { %s3985_s26 = smov [#allocation8]   ;;  %s3950_s10 = scalar_lea.hbm %s4209_s5, 8192 }
  0x38   :  { %s62_s28 = sshll.u32 %s3985_s26, 4  ;;  %p3951_p10 = scmp.ne.s32.totalorder %s4209_s5, %s3950_s10  ;;  %s63_s28 = int_to_ptr.vmem [resolvable:$true] %s62_s28 }
  0x39   :  { %p3954_p11 = scmp.lt.u32.totalorder %s3950_s10, %s4209_s5 }
  0x3b   :  { %p3956_p12 = pnand %p3954_p11, %p3951_p10 }
  0x3d   :  { %3959 = shalt.err (!%p3956_p12)
}
  0x3e   :  { %s3960_s12 = scalar_lea.vmem %s63_s28, 8192  ;;  %p3965_p0 = scmp.lt.s32.totalorder %s63_s28, %s63_s28 }
  0x3f   :  { %p3961_p13 = scmp.ne.s32.totalorder %s63_s28, %s3960_s12  ;;  %p3966_p1 = scmp.lt.s32.totalorder %s3960_s12, %s3960_s12 }
  0x41   :  { %p3967_p2 = por %p3966_p1, %p3965_p0 }
  0x43   :  { %p3968_p3 = pnand %p3967_p2, %p3961_p13 }
  0x45   :  { %3971 = shalt.err (!%p3968_p3)
}
  0x46   :  { %s3986_s3 = smov 128   ;;  %s3987_s27 = smov 8  }
  0x47   :  { %68 = dma.hbm_to_vmem [thread:$0]  %s4209_s5, 8192, %s63_s28, [#allocation9], %s3986_s3, %s3986_s3, %s3987_s27  }
  0x48   :  { %3972 = dma.done.wait [#allocation4], 64  }
  0x49   :  { %3973 = vsyncadd [#allocation4], 4294967232 }
  0x4a   :  { %3974 = dma.done.wait [#allocation6], 37888  }
  0x4b   :  { %3975 = vsyncadd [#allocation6], 4294929408 }
  0x4c   :  { %3976 = dma.done.wait [#allocation9], 8192  }
  0x4d   :  { %3977 = vsyncadd [#allocation9], 4294959104  ;;  %v3988_v1 = vmov 0   ;;  %v89_v2 = vld [vmem:[#allocation5] sm:$0xff]  ;;  %v90_v4 = vld [vmem:[#allocation5 + $0x8] sm:$0xff]  ;;  %vm371_vm0 = vcmask 654336  }
  0x4e   :  { %407 = vmatprep.mubr.bf16.mxu0 %v3988_v1  ;;  %448 = vmatprep.mubr.bf16.mxu1 %v3988_v1  ;;  %v93_v3 = vld [vmem:[#allocation5 + $0x20] sm:$0xff]  ;;  %v94_v6 = vld [vmem:[#allocation5 + $0x28] sm:$0xff]  ;;  %v91_v39 = vld [vmem:[#allocation5 + $0x10] sm:$0xff]  ;;  %vm2983_vm1 = vcmask 7168  }
  0x4f   :  { %v2993_v5 = vcombine.high %v89_v2, %v93_v3  ;;  %v2992_v7 = vcombine.low %v89_v2, %v93_v3  ;;  %v97_v8 = vld [vmem:[#allocation5 + $0x40] sm:$0xff]  ;;  %v2995_v10 = vcombine.high %v90_v4, %v94_v6  ;;  %v2994_v11 = vcombine.low %v90_v4, %v94_v6  ;;  %v98_v13 = vld [vmem:[#allocation5 + $0x48] sm:$0xff]  ;;  %v95_v41 = vld [vmem:[#allocation5 + $0x30] sm:$0xff] }
  0x50   :  { %v101_v9 = vld [vmem:[#allocation5 + $0x60] sm:$0xff]  ;;  %v102_v14 = vld [vmem:[#allocation5 + $0x68] sm:$0xff]  ;;  %v92_v42 = vld [vmem:[#allocation5 + $0x18] sm:$0xff]  ;;  %v2997_v46 = vcombine.high %v91_v39, %v95_v41  ;;  %v2996_v52 = vcombine.low %v91_v39, %v95_v41 }
  0x51   :  { %v3001_v12 = vcombine.high %v97_v8, %v101_v9  ;;  %v105_v15 = vld [vmem:[#allocation5 + $0x80] sm:$0xff]  ;;  %375 = vmatprep.subr.bf16.mxu0 %v2993_v5  ;;  %v3003_v16 = vcombine.high %v98_v13, %v102_v14  ;;  %v106_v18 = vld [vmem:[#allocation5 + $0x88] sm:$0xff]  ;;  %416 = vmatprep.subr.bf16.mxu1 %v2995_v10  ;;  %v3000_v20 = vcombine.low %v97_v8, %v101_v9  ;;  %v96_v43 = vld [vmem:[#allocation5 + $0x38] sm:$0xff] }
  0x52   :  { %v109_v17 = vld [vmem:[#allocation5 + $0xa0] sm:$0xff]  ;;  %v110_v19 = vld [vmem:[#allocation5 + $0xa8] sm:$0xff]  ;;  %376 = vmatpush1.bf16.msra.mxu0 %v2992_v7  ;;  %417 = vmatpush1.bf16.msra.mxu1 %v2994_v11  ;;  %v3002_v21 = vcombine.low %v98_v13, %v102_v14  ;;  %v4092_v47 = vld [vmem:[#allocation3] sm:$0xf]  ;;  %v2999_v50 = vcombine.high %v92_v42, %v96_v43  ;;  %v2998_v57 = vcombine.low %v92_v42, %v96_v43 }
  0x53   :  { %377 = vmatprep.subr.bf16.mxu0 %v3001_v12  ;;  %v3009_v22 = vcombine.high %v105_v15, %v109_v17  ;;  %418 = vmatprep.subr.bf16.mxu1 %v3003_v16  ;;  %v3011_v23 = vcombine.high %v106_v18, %v110_v19  ;;  %v113_v24 = vld [vmem:[#allocation5 + $0xc0] sm:$0xff]  ;;  %v114_v26 = vld [vmem:[#allocation5 + $0xc8] sm:$0xff]  ;;  %v3008_v28 = vcombine.low %v105_v15, %v109_v17  ;;  %v99_v48 = vld [vmem:[#allocation5 + $0x50] sm:$0xff] }
  0x54   :  { %v117_v25 = vld [vmem:[#allocation5 + $0xe0] sm:$0xff]  ;;  %v118_v27 = vld [vmem:[#allocation5 + $0xe8] sm:$0xff]  ;;  %v3010_v29 = vcombine.low %v106_v18, %v110_v19  ;;  %v103_v49 = vld [vmem:[#allocation5 + $0x70] sm:$0xff] }
  0x55   :  { %v3017_v30 = vcombine.high %v113_v24, %v117_v25  ;;  %v3019_v31 = vcombine.high %v114_v26, %v118_v27  ;;  %v121_v32 = vld [vmem:[#allocation5 + $0x100] sm:$0xff]  ;;  %v122_v34 = vld [vmem:[#allocation5 + $0x108] sm:$0xff]  ;;  %v3016_v36 = vcombine.low %v113_v24, %v117_v25  ;;  %v3018_v37 = vcombine.low %v114_v26, %v118_v27  ;;  %v100_v51 = vld [vmem:[#allocation5 + $0x58] sm:$0xff] }
  0x56   :  { %378 = vmatpush1.bf16.msra.mxu0 %v3000_v20  ;;  %419 = vmatpush1.bf16.msra.mxu1 %v3002_v21  ;;  %v125_v33 = vld [vmem:[#allocation5 + $0x120] sm:$0xff]  ;;  %v126_v35 = vld [vmem:[#allocation5 + $0x128] sm:$0xff]  ;;  %v104_v53 = vld [vmem:[#allocation5 + $0x78] sm:$0xff]  ;;  %v3005_v54 = vcombine.high %v99_v48, %v103_v49  ;;  %v3004_v60 = vcombine.low %v99_v48, %v103_v49 }
  0x57   :  { %379 = vmatprep.subr.bf16.mxu0 %v3009_v22  ;;  %420 = vmatprep.subr.bf16.mxu1 %v3011_v23  ;;  %v3025_v38 = vcombine.high %v121_v32, %v125_v33  ;;  %v3027_v40 = vcombine.high %v122_v34, %v126_v35  ;;  %v3024_v44 = vcombine.low %v121_v32, %v125_v33  ;;  %v107_v55 = vld [vmem:[#allocation5 + $0x90] sm:$0xff]  ;;  %v108_v59 = vld [vmem:[#allocation5 + $0x98] sm:$0xff] }
  0x58   :  { %v3026_v45 = vcombine.low %v122_v34, %v126_v35  ;;  %v111_v56 = vld [vmem:[#allocation5 + $0xb0] sm:$0xff]  ;;  %v3007_v58 = vcombine.high %v100_v51, %v104_v53  ;;  %v112_v61 = vld [vmem:[#allocation5 + $0xb8] sm:$0xff]  ;;  %v3006_v2 = vcombine.low %v100_v51, %v104_v53 }
  0x59   :  { %v3013_v62 = vcombine.high %v107_v55, %v111_v56  ;;  %v115_v63 = vld [vmem:[#allocation5 + $0xd0] sm:$0xff]  ;;  %v3015_v3 = vcombine.high %v108_v59, %v112_v61  ;;  %v116_v4 = vld [vmem:[#allocation5 + $0xd8] sm:$0xff]  ;;  %v3012_v5 = vcombine.low %v107_v55, %v111_v56  ;;  %v3014_v10 = vcombine.low %v108_v59, %v112_v61 }
  0x5a   :  { %380 = vmatpush1.bf16.msra.mxu0 %v3008_v28  ;;  %421 = vmatpush1.bf16.msra.mxu1 %v3010_v29  ;;  %v119_v0 = vld [vmem:[#allocation5 + $0xf0] sm:$0xff]  ;;  %v120_v6 = vld [vmem:[#allocation5 + $0xf8] sm:$0xff] }
  0x5b   :  { %381 = vmatprep.subr.bf16.mxu0 %v3017_v30  ;;  %422 = vmatprep.subr.bf16.mxu1 %v3019_v31  ;;  %v3021_v7 = vcombine.high %v115_v63, %v119_v0  ;;  %v123_v8 = vld [vmem:[#allocation5 + $0x110] sm:$0xff]  ;;  %v3023_v11 = vcombine.high %v116_v4, %v120_v6  ;;  %v124_v12 = vld [vmem:[#allocation5 + $0x118] sm:$0xff]  ;;  %v3020_v13 = vcombine.low %v115_v63, %v119_v0 }
  0x5c   :  { %v127_v9 = vld [vmem:[#allocation5 + $0x130] sm:$0xff]  ;;  %v128_v14 = vld [vmem:[#allocation5 + $0x138] sm:$0xff]  ;;  %v3022_v15 = vcombine.low %v116_v4, %v120_v6 }
  0x5d   :  { %v3031_v16 = vcombine.high %v124_v12, %v128_v14  ;;  %v3028_v17 = vcombine.low %v123_v8, %v127_v9  ;;  %v3405_v18 = vld [vmem:[#allocation7 + $0x204] ss:$16 sps:$4 sm:$0xff]   ;;  %v3030_v19 = vcombine.low %v124_v12, %v128_v14  ;;  %v3403_v21 = vld [vmem:[#allocation7 + $0x200] ss:$16 sps:$4 sm:$0xff]  }
  0x5e   :  { %382 = vmatpush1.bf16.msra.mxu0 %v3016_v36  ;;  %423 = vmatpush1.bf16.msra.mxu1 %v3018_v37  ;;  %v3402_v20 = vld [vmem:[#allocation7 + $0x4] ss:$16 sps:$4 sm:$0xff]   ;;  %v3400_v23 = vld [vmem:[#allocation7] ss:$16 sps:$4 sm:$0xff]  }
  0x5f   :  { %383 = vmatprep.subr.bf16.mxu0 %v3025_v38  ;;  %424 = vmatprep.subr.bf16.mxu1 %v3027_v40  ;;  %v3411_v22 = vld [vmem:[#allocation7 + $0x224] ss:$16 sps:$4 sm:$0xff]   ;;  %v3409_v25 = vld [vmem:[#allocation7 + $0x220] ss:$16 sps:$4 sm:$0xff]  }
  0x60   :  { %v3408_v24 = vld [vmem:[#allocation7 + $0x24] ss:$16 sps:$4 sm:$0xff]   ;;  %v3406_v27 = vld [vmem:[#allocation7 + $0x20] ss:$16 sps:$4 sm:$0xff]  }
  0x61   :  { %v3417_v26 = vld [vmem:[#allocation7 + $0x244] ss:$16 sps:$4 sm:$0xff]   ;;  %v3415_v29 = vld [vmem:[#allocation7 + $0x240] ss:$16 sps:$4 sm:$0xff]  }
  0x62   :  { %384 = vmatpush1.bf16.msra.mxu0 %v3024_v44  ;;  %425 = vmatpush1.bf16.msra.mxu1 %v3026_v45  ;;  %v3414_v28 = vld [vmem:[#allocation7 + $0x44] ss:$16 sps:$4 sm:$0xff]   ;;  %v3412_v30 = vld [vmem:[#allocation7 + $0x40] ss:$16 sps:$4 sm:$0xff]  }
  0x63   :  { %457 = vmatprep.subr.bf16.mxu0 %v2997_v46  ;;  %498 = vmatprep.subr.bf16.mxu1 %v2999_v50  ;;  %v3423_v31 = vld [vmem:[#allocation7 + $0x264] ss:$16 sps:$4 sm:$0xff]   ;;  %v3421_v33 = vld [vmem:[#allocation7 + $0x260] ss:$16 sps:$4 sm:$0xff]  }
  0x64   :  { %v3420_v32 = vld [vmem:[#allocation7 + $0x64] ss:$16 sps:$4 sm:$0xff]   ;;  %v3418_v35 = vld [vmem:[#allocation7 + $0x60] ss:$16 sps:$4 sm:$0xff]  }
  0x65   :  { %3032 = vmatmul.mubr.msk.bf16.vlgmr.msra.gmra.mrb[0].mxu0 %vm371_vm0, %v4092_v47  ;;  %3033 = vmatmul.mubr.msk.bf16.vlgmr.msra.gmra.mrb[0].mxu1 %vm371_vm0, %v4092_v47  ;;  %v3429_v34 = vld [vmem:[#allocation7 + $0x284] ss:$16 sps:$4 sm:$0xff]   ;;  %v3427_v37 = vld [vmem:[#allocation7 + $0x280] ss:$16 sps:$4 sm:$0xff]  }
  0x66   :  { %458 = vmatpush1.bf16.msra.mxu0 %v2996_v52  ;;  %489 = vmatprep.mubr.bf16.mxu0 %v3988_v1  ;;  %v3426_v36 = vld [vmem:[#allocation7 + $0x84] ss:$16 sps:$4 sm:$0xff]   ;;  %v3424_v39 = vld [vmem:[#allocation7 + $0x80] ss:$16 sps:$4 sm:$0xff]  }
  0x67   :  { %459 = vmatprep.subr.bf16.mxu0 %v3005_v54  ;;  %499 = vmatpush1.bf16.msra.mxu1 %v2998_v57  ;;  %v3435_v38 = vld [vmem:[#allocation7 + $0x2a4] ss:$16 sps:$4 sm:$0xff]   ;;  %v3433_v41 = vld [vmem:[#allocation7 + $0x2a0] ss:$16 sps:$4 sm:$0xff]  }
  0x68   :  { %530 = vmatprep.mubr.bf16.mxu1 %v3988_v1  ;;  %500 = vmatprep.subr.bf16.mxu1 %v3007_v58  ;;  %v3029_v1 = vcombine.high %v123_v8, %v127_v9  ;;  %v3432_v40 = vld [vmem:[#allocation7 + $0xa4] ss:$16 sps:$4 sm:$0xff]   ;;  %v3430_v43 = vld [vmem:[#allocation7 + $0xa0] ss:$16 sps:$4 sm:$0xff]  }
  0x69   :  { %v3441_v42 = vld [vmem:[#allocation7 + $0x2c4] ss:$16 sps:$4 sm:$0xff]   ;;  %v3439_v45 = vld [vmem:[#allocation7 + $0x2c0] ss:$16 sps:$4 sm:$0xff]  }
  0x6a   :  { %460 = vmatpush1.bf16.msra.mxu0 %v3004_v60  ;;  %v3438_v44 = vld [vmem:[#allocation7 + $0xc4] ss:$16 sps:$4 sm:$0xff]   ;;  %v3445_v49 = vld [vmem:[#allocation7 + $0x2e0] ss:$16 sps:$4 sm:$0xff]  }
  0x6b   :  { %461 = vmatprep.subr.bf16.mxu0 %v3013_v62  ;;  %501 = vmatpush1.bf16.msra.mxu1 %v3006_v2  ;;  %v3447_v46 = vld [vmem:[#allocation7 + $0x2e4] ss:$16 sps:$4 sm:$0xff]   ;;  %v3442_v51 = vld [vmem:[#allocation7 + $0xe0] ss:$16 sps:$4 sm:$0xff]  }
  0x6c   :  { %502 = vmatprep.subr.bf16.mxu1 %v3015_v3  ;;  %v3444_v48 = vld [vmem:[#allocation7 + $0xe4] ss:$16 sps:$4 sm:$0xff]   ;;  %v3451_v53 = vld [vmem:[#allocation7 + $0x300] ss:$16 sps:$4 sm:$0xff]  }
  0x6d   :  { %v3453_v50 = vld [vmem:[#allocation7 + $0x304] ss:$16 sps:$4 sm:$0xff]   ;;  %v3448_v55 = vld [vmem:[#allocation7 + $0x100] ss:$16 sps:$4 sm:$0xff]  }
  0x6e   :  { %462 = vmatpush1.bf16.msra.mxu0 %v3012_v5  ;;  %v3450_v52 = vld [vmem:[#allocation7 + $0x104] ss:$16 sps:$4 sm:$0xff]   ;;  %v3457_v57 = vld [vmem:[#allocation7 + $0x320] ss:$16 sps:$4 sm:$0xff]  }
  0x6f   :  { %463 = vmatprep.subr.bf16.mxu0 %v3021_v7  ;;  %503 = vmatpush1.bf16.msra.mxu1 %v3014_v10  ;;  %v3459_v54 = vld [vmem:[#allocation7 + $0x324] ss:$16 sps:$4 sm:$0xff]   ;;  %v3454_v59 = vld [vmem:[#allocation7 + $0x120] ss:$16 sps:$4 sm:$0xff]  }
  0x70   :  { %504 = vmatprep.subr.bf16.mxu1 %v3023_v11  ;;  %v3456_v56 = vld [vmem:[#allocation7 + $0x124] ss:$16 sps:$4 sm:$0xff]   ;;  %v3463_v61 = vld [vmem:[#allocation7 + $0x340] ss:$16 sps:$4 sm:$0xff]  }
  0x71   :  { %v3465_v58 = vld [vmem:[#allocation7 + $0x344] ss:$16 sps:$4 sm:$0xff]   ;;  %v3460_v63 = vld [vmem:[#allocation7 + $0x140] ss:$16 sps:$4 sm:$0xff]  }
  0x72   :  { %464 = vmatpush1.bf16.msra.mxu0 %v3020_v13  ;;  %v3462_v60 = vld [vmem:[#allocation7 + $0x144] ss:$16 sps:$4 sm:$0xff]   ;;  %v3469_v2 = vld [vmem:[#allocation7 + $0x360] ss:$16 sps:$4 sm:$0xff]  }
  0x73   :  { %465 = vmatprep.subr.bf16.mxu0 %v3029_v1  ;;  %505 = vmatpush1.bf16.msra.mxu1 %v3022_v15  ;;  %v3471_v62 = vld [vmem:[#allocation7 + $0x364] ss:$16 sps:$4 sm:$0xff]   ;;  %v3466_v4 = vld [vmem:[#allocation7 + $0x160] ss:$16 sps:$4 sm:$0xff]  }
  0x74   :  { %506 = vmatprep.subr.bf16.mxu1 %v3031_v16  ;;  %v3468_v0 = vld [vmem:[#allocation7 + $0x164] ss:$16 sps:$4 sm:$0xff]   ;;  %v3475_v6 = vld [vmem:[#allocation7 + $0x380] ss:$16 sps:$4 sm:$0xff]  }
  0x75   :  { %v3477_v3 = vld [vmem:[#allocation7 + $0x384] ss:$16 sps:$4 sm:$0xff]   ;;  %v3472_v8 = vld [vmem:[#allocation7 + $0x180] ss:$16 sps:$4 sm:$0xff]  }
  0x76   :  { %466 = vmatpush1.bf16.msra.mxu0 %v3028_v17  ;;  %v3474_v5 = vld [vmem:[#allocation7 + $0x184] ss:$16 sps:$4 sm:$0xff]   ;;  %v3481_v10 = vld [vmem:[#allocation7 + $0x3a0] ss:$16 sps:$4 sm:$0xff]  }
  0x77   :  { %2162 = vmatprep.subr.bf16.mxu0 %v3405_v18  ;;  %507 = vmatpush1.bf16.msra.mxu1 %v3030_v19  ;;  %v3483_v7 = vld [vmem:[#allocation7 + $0x3a4] ss:$16 sps:$4 sm:$0xff]   ;;  %v3478_v11 = vld [vmem:[#allocation7 + $0x1a0] ss:$16 sps:$4 sm:$0xff]  }
  0x78   :  { %2121 = vmatprep.subr.bf16.mxu1 %v3402_v20  ;;  %v3480_v9 = vld [vmem:[#allocation7 + $0x1a4] ss:$16 sps:$4 sm:$0xff]   ;;  %v3484_v14 = vld [vmem:[#allocation7 + $0x1c0] ss:$16 sps:$4 sm:$0xff]   ;;  %v3501_v20 = vld [vmem:[#allocation7 + $0xc] ss:$16 sps:$4 sm:$0xff]  }
  0x79   :  { %3034 = vmatmul.mubr.msk.bf16.vlgmr.msra.gmra.mrb[4].mxu0 %vm371_vm0, %v4092_v47  ;;  %v3486_v12 = vld [vmem:[#allocation7 + $0x1c4] ss:$16 sps:$4 sm:$0xff]   ;;  %v3487_v1 = vld [vmem:[#allocation7 + $0x3c0] ss:$16 sps:$4 sm:$0xff]  }
  0x7a   :  { %2163 = vmatpush1.bf16.msra.mxu0 %v3403_v21  ;;  %3035 = vmatmul.mubr.msk.bf16.vlgmr.msra.gmra.mrb[4].mxu1 %vm371_vm0, %v4092_v47  ;;  %v3436_v47 = vld [vmem:[#allocation7 + $0xc0] ss:$16 sps:$4 sm:$0xff]   ;;  %v3489_v13 = vld [vmem:[#allocation7 + $0x3c4] ss:$16 sps:$4 sm:$0xff]   ;;  %v131_v21 = vlaneseq }
  0x7b   :  { %2164 = vmatprep.subr.bf16.mxu0 %v3411_v22  ;;  %2122 = vmatpush1.bf16.msra.mxu1 %v3400_v23  ;;  %v3492_v15 = vld [vmem:[#allocation7 + $0x1e4] ss:$16 sps:$4 sm:$0xff]   ;;  %v3490_v17 = vld [vmem:[#allocation7 + $0x1e0] ss:$16 sps:$4 sm:$0xff]  }
  0x7c   :  { %2123 = vmatprep.subr.bf16.mxu1 %v3408_v24  ;;  %v3495_v16 = vld [vmem:[#allocation7 + $0x3e4] ss:$16 sps:$4 sm:$0xff]   ;;  %v3493_v18 = vld [vmem:[#allocation7 + $0x3e0] ss:$16 sps:$4 sm:$0xff]   ;;  %v4104_v22 = vshrl.u32 %v131_v21, 7 }
  0x7d   :  { %v3498_v19 = vld [vmem:[#allocation7 + $0x404] ss:$16 sps:$4 sm:$0xff]   ;;  %v4112_v24 = vld [vmem:[%s4206_s2] sm:$0xff] }
  0x7e   :  { %2165 = vmatpush1.bf16.msra.mxu0 %v3409_v25  ;;  %v4107_v23 = vsub.s32 0, %v4104_v22  ;;  %v4115_v25 = vsub.s32 2, %v4104_v22 }
  0x7f   :  { %2166 = vmatprep.subr.bf16.mxu0 %v3417_v26  ;;  %2124 = vmatpush1.bf16.msra.mxu1 %v3406_v27  ;;  %v4118_v26 = vsub.s32 1, %v4104_v22  ;;  %v145_v27 = vsub.s32 3, %v4104_v22 }
  0x80   :  { %2125 = vmatprep.subr.bf16.mxu1 %v3414_v28  ;;  %v134_v28 = vrot.slane %v4112_v24, %v4107_v23 }
  0x82   :  { %2167 = vmatpush1.bf16.msra.mxu0 %v3415_v29  ;;  %v142_v29 = vrot.slane %v4112_v24, %v4115_v25 }
  0x83   :  { %2168 = vmatprep.subr.bf16.mxu0 %v3423_v31  ;;  %2126 = vmatpush1.bf16.msra.mxu1 %v3412_v30  ;;  %v138_v30 = vrot.slane %v4112_v24, %v4118_v26  ;;  %v146_v31 = vrot.slane %v4112_v24, %v145_v27 }
  0x84   :  { %2127 = vmatprep.subr.bf16.mxu1 %v3420_v32 }
  0x86   :  { %2169 = vmatpush1.bf16.msra.mxu0 %v3421_v33 }
  0x87   :  { %2170 = vmatprep.subr.bf16.mxu0 %v3429_v34  ;;  %2128 = vmatpush1.bf16.msra.mxu1 %v3418_v35 }
  0x88   :  { %2129 = vmatprep.subr.bf16.mxu1 %v3426_v36 }
  0x8a   :  { %2171 = vmatpush1.bf16.msra.mxu0 %v3427_v37 }
  0x8b   :  { %2172 = vmatprep.subr.bf16.mxu0 %v3435_v38  ;;  %2130 = vmatpush1.bf16.msra.mxu1 %v3424_v39 }
  0x8c   :  { %2131 = vmatprep.subr.bf16.mxu1 %v3432_v40 }
  0x8e   :  { %2173 = vmatpush1.bf16.msra.mxu0 %v3433_v41 }
  0x8f   :  { %2174 = vmatprep.subr.bf16.mxu0 %v3441_v42  ;;  %2132 = vmatpush1.bf16.msra.mxu1 %v3430_v43 }
  0x90   :  { %2133 = vmatprep.subr.bf16.mxu1 %v3438_v44 }
  0x92   :  { %2175 = vmatpush1.bf16.msra.mxu0 %v3439_v45 }
  0x93   :  { %2176 = vmatprep.subr.bf16.mxu0 %v3447_v46  ;;  %2134 = vmatpush1.bf16.msra.mxu1 %v3436_v47 }
  0x94   :  { %2135 = vmatprep.subr.bf16.mxu1 %v3444_v48 }
  0x96   :  { %2177 = vmatpush1.bf16.msra.mxu0 %v3445_v49 }
  0x97   :  { %2178 = vmatprep.subr.bf16.mxu0 %v3453_v50  ;;  %2136 = vmatpush1.bf16.msra.mxu1 %v3442_v51 }
  0x98   :  { %2137 = vmatprep.subr.bf16.mxu1 %v3450_v52 }
  0x9a   :  { %2179 = vmatpush1.bf16.msra.mxu0 %v3451_v53 }
  0x9b   :  { %2180 = vmatprep.subr.bf16.mxu0 %v3459_v54  ;;  %2138 = vmatpush1.bf16.msra.mxu1 %v3448_v55  ;;  %v3499_v54 = vld [vmem:[#allocation7 + $0x8] ss:$16 sps:$4 sm:$0xff]  }
  0x9c   :  { %2139 = vmatprep.subr.bf16.mxu1 %v3456_v56 }
  0x9e   :  { %2181 = vmatpush1.bf16.msra.mxu0 %v3457_v57  ;;  %v3496_v57 = vld [vmem:[#allocation7 + $0x400] ss:$16 sps:$4 sm:$0xff]  }
  0x9f   :  { %2182 = vmatprep.subr.bf16.mxu0 %v3465_v58  ;;  %2140 = vmatpush1.bf16.msra.mxu1 %v3454_v59  ;;  %v3504_v58 = vld [vmem:[#allocation7 + $0x424] ss:$16 sps:$4 sm:$0xff]   ;;  %v3507_v59 = vld [vmem:[#allocation7 + $0x2c] ss:$16 sps:$4 sm:$0xff]  }
  0xa0   :  { %2141 = vmatprep.subr.bf16.mxu1 %v3462_v60  ;;  %v3505_v60 = vld [vmem:[#allocation7 + $0x28] ss:$16 sps:$4 sm:$0xff]  }
  0xa2   :  { %2183 = vmatpush1.bf16.msra.mxu0 %v3463_v61  ;;  %v3502_v61 = vld [vmem:[#allocation7 + $0x420] ss:$16 sps:$4 sm:$0xff]  }
  0xa3   :  { %2184 = vmatprep.subr.bf16.mxu0 %v3471_v62  ;;  %2142 = vmatpush1.bf16.msra.mxu1 %v3460_v63  ;;  %v3513_v62 = vld [vmem:[#allocation7 + $0x4c] ss:$16 sps:$4 sm:$0xff]   ;;  %v3510_v63 = vld [vmem:[#allocation7 + $0x444] ss:$16 sps:$4 sm:$0xff]  }
  0xa4   :  { %2143 = vmatprep.subr.bf16.mxu1 %v3468_v0  ;;  %v153_v0 = vsub.s32 5, %v4104_v22 }
  0xa6   :  { %2185 = vmatpush1.bf16.msra.mxu0 %v3469_v2  ;;  %v3511_v2 = vld [vmem:[#allocation7 + $0x48] ss:$16 sps:$4 sm:$0xff]  }
  0xa7   :  { %2186 = vmatprep.subr.bf16.mxu0 %v3477_v3  ;;  %2144 = vmatpush1.bf16.msra.mxu1 %v3466_v4  ;;  %v3508_v3 = vld [vmem:[#allocation7 + $0x440] ss:$16 sps:$4 sm:$0xff]   ;;  %v3519_v4 = vld [vmem:[#allocation7 + $0x6c] ss:$16 sps:$4 sm:$0xff]  }
  0xa8   :  { %2145 = vmatprep.subr.bf16.mxu1 %v3474_v5  ;;  %v3516_v5 = vld [vmem:[#allocation7 + $0x464] ss:$16 sps:$4 sm:$0xff]  }
  0xaa   :  { %2187 = vmatpush1.bf16.msra.mxu0 %v3475_v6  ;;  %v154_v6 = vrot.slane %v4112_v24, %v153_v0  ;;  %v161_v0 = vsub.s32 7, %v4104_v22 }
  0xab   :  { %2188 = vmatprep.subr.bf16.mxu0 %v3483_v7  ;;  %2146 = vmatpush1.bf16.msra.mxu1 %v3472_v8  ;;  %v3517_v7 = vld [vmem:[#allocation7 + $0x68] ss:$16 sps:$4 sm:$0xff]  }
  0xac   :  { %2147 = vmatprep.subr.bf16.mxu1 %v3480_v9  ;;  %v3514_v9 = vld [vmem:[#allocation7 + $0x460] ss:$16 sps:$4 sm:$0xff]  }
  0xae   :  { %2189 = vmatpush1.bf16.msra.mxu0 %v3481_v10  ;;  %v3525_v10 = vld [vmem:[#allocation7 + $0x8c] ss:$16 sps:$4 sm:$0xff]  }
  0xaf   :  { %2148 = vmatpush1.bf16.msra.mxu1 %v3478_v11  ;;  %2190 = vmatprep.subr.bf16.mxu0 %v3489_v13 }
  0xb0   :  { %2149 = vmatprep.subr.bf16.mxu1 %v3486_v12  ;;  %v3522_v12 = vld [vmem:[#allocation7 + $0x484] ss:$16 sps:$4 sm:$0xff]  }
  0xb2   :  { %2191 = vmatpush1.bf16.msra.mxu0 %v3487_v1 }
  0xb3   :  { %2150 = vmatpush1.bf16.msra.mxu1 %v3484_v14  ;;  %2192 = vmatprep.subr.bf16.mxu0 %v3495_v16 }
  0xb4   :  { %2151 = vmatprep.subr.bf16.mxu1 %v3492_v15 }
  0xb6   :  { %2193 = vmatpush1.bf16.msra.mxu0 %v3493_v18 }
  0xb7   :  { %2152 = vmatpush1.bf16.msra.mxu1 %v3490_v17  ;;  %2203 = vmatprep.subr.bf16.mxu0 %v3498_v19  ;;  %v3523_v17 = vld [vmem:[#allocation7 + $0x88] ss:$16 sps:$4 sm:$0xff]   ;;  %v3520_v19 = vld [vmem:[#allocation7 + $0x480] ss:$16 sps:$4 sm:$0xff]  }
  0xb8   :  { %2285 = vmatprep.subr.bf16.mxu1 %v3501_v20  ;;  %v3531_v20 = vld [vmem:[#allocation7 + $0xac] ss:$16 sps:$4 sm:$0xff]  }
 0x138   :  { %v409_v32 = vpop.f32.mrb[0].mxu0  ;;  %v450_v34 = vpop.f32.mrb[0].mxu1 }
 0x139   :  { %v410_v33 = vadd.f32 %v409_v32, %v134_v28  ;;  %v411_v35 = vpop.f32.mrb[1].mxu0  ;;  %v451_v36 = vadd.f32 %v450_v34, %v142_v29  ;;  %v452_v38 = vpop.f32.mrb[1].mxu1  ;;  %v3528_v28 = vld [vmem:[#allocation7 + $0x4a4] ss:$16 sps:$4 sm:$0xff]   ;;  %v3537_v34 = vld [vmem:[#allocation7 + $0xcc] ss:$16 sps:$4 sm:$0xff]  }
 0x13a   :  { %v412_v37 = vadd.f32 %v411_v35, %v138_v30  ;;  %v413_v39 = vpop.f32.mrb[2].mxu0  ;;  %v453_v41 = vadd.f32 %v452_v38, %v146_v31  ;;  %v454_v43 = vpop.f32.mrb[2].mxu1  ;;  %v3529_v31 = vld [vmem:[#allocation7 + $0xa8] ss:$16 sps:$4 sm:$0xff]   ;;  %v3534_v35 = vld [vmem:[#allocation7 + $0x4c4] ss:$16 sps:$4 sm:$0xff]  }
 0x13b   :  { %v539_v40 = vmul.f32 0.2, %v410_v33  ;;  %v414_v42 = vpop.f32.mrb[3].mxu0  ;;  %v541_v44 = vmul.f32 0.2, %v451_v36  ;;  %v455_v46 = vpop.f32.mrb[3].mxu1 }
 0x13c   :  { %v540_v45 = vmul.f32 0.2, %v412_v37  ;;  %v542_v48 = vmul.f32 0.2, %v453_v41  ;;  %v3543_v38 = vld [vmem:[#allocation7 + $0xec] ss:$16 sps:$4 sm:$0xff]  }
 0x13d   :  { %v547_v47 = vmax.f32 %v410_v33, %v539_v40  ;;  %v549_v49 = vmax.f32 %v451_v36, %v541_v44  ;;  %v3526_v33 = vld [vmem:[#allocation7 + $0x4a0] ss:$16 sps:$4 sm:$0xff]   ;;  %v3535_v36 = vld [vmem:[#allocation7 + $0xc8] ss:$16 sps:$4 sm:$0xff]   ;;  %v3540_v39 = vld [vmem:[#allocation7 + $0x4e4] ss:$16 sps:$4 sm:$0xff]  }
 0x13e   :  { %v548_v50 = vmax.f32 %v412_v37, %v540_v45  ;;  %v550_v51 = vmax.f32 %v453_v41, %v542_v48  ;;  %v3532_v37 = vld [vmem:[#allocation7 + $0x4c0] ss:$16 sps:$4 sm:$0xff]   ;;  %v3541_v40 = vld [vmem:[#allocation7 + $0xe8] ss:$16 sps:$4 sm:$0xff]   ;;  %v3549_v42 = vld [vmem:[#allocation7 + $0x10c] ss:$16 sps:$4 sm:$0xff]  }
 0x13f   :  { %v4130_v52 = vpack.c.bf16 %v549_v49, %v549_v49  ;;  %v4132_v55 = vpack.c.bf16 %v547_v47, %v547_v47  ;;  %v3538_v41 = vld [vmem:[#allocation7 + $0x4e0] ss:$16 sps:$4 sm:$0xff]   ;;  %v3546_v43 = vld [vmem:[#allocation7 + $0x504] ss:$16 sps:$4 sm:$0xff]   ;;  %v3547_v44 = vld [vmem:[#allocation7 + $0x108] ss:$16 sps:$4 sm:$0xff]  }
 0x140   :  { %v556_v53 = vpack.c.bf16 %v548_v50, %v548_v50  ;;  %v4134_v56 = vpack.c.bf16 %v550_v51, %v550_v51  ;;  %v3544_v45 = vld [vmem:[#allocation7 + $0x500] ss:$16 sps:$4 sm:$0xff]   ;;  %v3555_v46 = vld [vmem:[#allocation7 + $0x12c] ss:$16 sps:$4 sm:$0xff]   ;;  %v3552_v47 = vld [vmem:[#allocation7 + $0x524] ss:$16 sps:$4 sm:$0xff]  }
 0x141   :  { %v3553_v48 = vld [vmem:[#allocation7 + $0x128] ss:$16 sps:$4 sm:$0xff]   ;;  %v3550_v49 = vld [vmem:[#allocation7 + $0x520] ss:$16 sps:$4 sm:$0xff]   ;;  %v3561_v50 = vld [vmem:[#allocation7 + $0x14c] ss:$16 sps:$4 sm:$0xff]  }
 0x142   :  { %2153 = vmatprep.mubr.bf16.mxu1 %v556_v53  ;;  %2194 = vmatprep.mubr.bf16.mxu0 %v4134_v56  ;;  %v3558_v51 = vld [vmem:[#allocation7 + $0x544] ss:$16 sps:$4 sm:$0xff]  }
 0x143   :  { %2154 = vmatmul.mubr.bf16.vlgmr.msra.gmra.mrb[8].mxu1 %v4132_v55  ;;  %2195 = vmatmul.mubr.bf16.vlgmr.msra.gmra.mrb[8].mxu0 %v4130_v52 }
 0x144   :  { %2286 = vmatpush1.bf16.msra.mxu1 %v3499_v54  ;;  %2204 = vmatpush1.bf16.msra.mxu0 %v3496_v57  ;;  %v3556_v54 = vld [vmem:[#allocation7 + $0x540] ss:$16 sps:$4 sm:$0xff]   ;;  %v3567_v57 = vld [vmem:[#allocation7 + $0x16c] ss:$16 sps:$4 sm:$0xff]  }
 0x145   :  { %2317 = vmatprep.mubr.bf16.mxu1 %v556_v53  ;;  %2205 = vmatprep.subr.bf16.mxu0 %v3504_v58  ;;  %v3559_v53 = vld [vmem:[#allocation7 + $0x148] ss:$16 sps:$4 sm:$0xff]   ;;  %v3564_v58 = vld [vmem:[#allocation7 + $0x564] ss:$16 sps:$4 sm:$0xff]  }
 0x146   :  { %2287 = vmatprep.subr.bf16.mxu1 %v3507_v59  ;;  %v3565_v59 = vld [vmem:[#allocation7 + $0x168] ss:$16 sps:$4 sm:$0xff]  }
 0x148   :  { %2288 = vmatpush1.bf16.msra.mxu1 %v3505_v60  ;;  %2206 = vmatpush1.bf16.msra.mxu0 %v3502_v61  ;;  %v149_v60 = vsub.s32 4, %v4104_v22  ;;  %v3562_v61 = vld [vmem:[#allocation7 + $0x560] ss:$16 sps:$4 sm:$0xff]  }
 0x149   :  { %2289 = vmatprep.subr.bf16.mxu1 %v3513_v62  ;;  %2207 = vmatprep.subr.bf16.mxu0 %v3510_v63  ;;  %v3573_v62 = vld [vmem:[#allocation7 + $0x18c] ss:$16 sps:$4 sm:$0xff]   ;;  %v3570_v63 = vld [vmem:[#allocation7 + $0x584] ss:$16 sps:$4 sm:$0xff]  }
 0x14c   :  { %2290 = vmatpush1.bf16.msra.mxu1 %v3511_v2  ;;  %v4141_v8 = vpop.f32.mrb[4].mxu0  ;;  %2208 = vmatpush1.bf16.msra.mxu0 %v3508_v3  ;;  %v3571_v2 = vld [vmem:[#allocation7 + $0x188] ss:$16 sps:$4 sm:$0xff]   ;;  %v150_v3 = vrot.slane %v4112_v24, %v149_v60 }
 0x14d   :  { %2291 = vmatprep.subr.bf16.mxu1 %v3519_v4  ;;  %v493_v11 = vpop.f32.mrb[5].mxu0  ;;  %2209 = vmatprep.subr.bf16.mxu0 %v3516_v5  ;;  %v4143_v14 = vpop.f32.mrb[4].mxu1  ;;  %v3568_v4 = vld [vmem:[#allocation7 + $0x580] ss:$16 sps:$4 sm:$0xff]   ;;  %v3579_v5 = vld [vmem:[#allocation7 + $0x1ac] ss:$16 sps:$4 sm:$0xff]  }
 0x14e   :  { %v494_v13 = vadd.f32 %v493_v11, %v154_v6  ;;  %v495_v1 = vpop.f32.mrb[6].mxu0  ;;  %v4145_v15 = vpop.f32.mrb[5].mxu1  ;;  %v3576_v6 = vld [vmem:[#allocation7 + $0x5a4] ss:$16 sps:$4 sm:$0xff]   ;;  %v3574_v11 = vld [vmem:[#allocation7 + $0x5a0] ss:$16 sps:$4 sm:$0xff]  }
 0x14f   :  { %v496_v16 = vpop.f32.mrb[7].mxu0  ;;  %v536_v21 = vpop.f32.mrb[6].mxu1  ;;  %v3631_v60 = vld [vmem:[#allocation7 + $0x2c8] ss:$16 sps:$4 sm:$0xff]  }
 0x150   :  { %2292 = vmatpush1.bf16.msra.mxu1 %v3517_v7  ;;  %v544_v18 = vmul.f32 0.2, %v494_v13  ;;  %2210 = vmatpush1.bf16.msra.mxu0 %v3514_v9  ;;  %v537_v30 = vpop.f32.mrb[7].mxu1  ;;  %v162_v7 = vrot.slane %v4112_v24, %v161_v0  ;;  %v3577_v9 = vld [vmem:[#allocation7 + $0x1a8] ss:$16 sps:$4 sm:$0xff]  }
 0x151   :  { %2293 = vmatprep.subr.bf16.mxu1 %v3525_v10  ;;  %2211 = vmatprep.subr.bf16.mxu0 %v3522_v12  ;;  %v492_v10 = vadd.f32 %v4141_v8, %v150_v3  ;;  %v3585_v12 = vld [vmem:[#allocation7 + $0x1cc] ss:$16 sps:$4 sm:$0xff]   ;;  %v3589_v8 = vld [vmem:[#allocation7 + $0x1e8] ss:$16 sps:$4 sm:$0xff]  }
 0x152   :  { %v552_v29 = vmax.f32 %v494_v13, %v544_v18  ;;  %v3582_v13 = vld [vmem:[#allocation7 + $0x5c4] ss:$16 sps:$4 sm:$0xff]   ;;  %v535_v1 = vadd.f32 %v4145_v15, %v162_v7  ;;  %v3580_v18 = vld [vmem:[#allocation7 + $0x5c0] ss:$16 sps:$4 sm:$0xff]   ;;  %v3597_v30 = vld [vmem:[#allocation7 + $0x20c] ss:$16 sps:$4 sm:$0xff]  }
 0x153   :  { %v543_v16 = vmul.f32 0.2, %v492_v10  ;;  %v3637_v0 = vld [vmem:[#allocation7 + $0x2e8] ss:$16 sps:$4 sm:$0xff]   ;;  %v3645_v3 = vld [vmem:[#allocation7 + $0x30c] ss:$16 sps:$4 sm:$0xff]  }
 0x154   :  { %2294 = vmatpush1.bf16.msra.mxu1 %v3523_v17  ;;  %v4147_v32 = vpack.c.bf16 %v552_v29, %v552_v29  ;;  %2212 = vmatpush1.bf16.msra.mxu0 %v3520_v19  ;;  %v3583_v17 = vld [vmem:[#allocation7 + $0x1c8] ss:$16 sps:$4 sm:$0xff]   ;;  %v3591_v19 = vld [vmem:[#allocation7 + $0x1ec] ss:$16 sps:$4 sm:$0xff]   ;;  %v546_v21 = vmul.f32 0.2, %v535_v1 }
 0x155   :  { %2295 = vmatprep.subr.bf16.mxu1 %v3531_v20  ;;  %2213 = vmatprep.subr.bf16.mxu0 %v3528_v28  ;;  %v3588_v20 = vld [vmem:[#allocation7 + $0x5e4] ss:$16 sps:$4 sm:$0xff]   ;;  %v551_v28 = vmax.f32 %v492_v10, %v543_v16  ;;  %v3586_v29 = vld [vmem:[#allocation7 + $0x5e0] ss:$16 sps:$4 sm:$0xff]   ;;  %v3651_v7 = vld [vmem:[#allocation7 + $0x32c] ss:$16 sps:$4 sm:$0xff]  }
 0x156   :  { %2235 = vmatprep.mubr.bf16.mxu0 %v4147_v32  ;;  %v554_v15 = vmax.f32 %v535_v1, %v546_v21  ;;  %v3649_v10 = vld [vmem:[#allocation7 + $0x328] ss:$16 sps:$4 sm:$0xff]   ;;  %v3652_v16 = vld [vmem:[#allocation7 + $0x740] ss:$16 sps:$4 sm:$0xff]  }
 0x157   :  { %v3655_v1 = vld [vmem:[#allocation7 + $0x348] ss:$16 sps:$4 sm:$0xff]   ;;  %v3658_v21 = vld [vmem:[#allocation7 + $0x760] ss:$16 sps:$4 sm:$0xff]  }
 0x158   :  { %2296 = vmatpush1.bf16.msra.mxu1 %v3529_v31  ;;  %2214 = vmatpush1.bf16.msra.mxu0 %v3526_v33  ;;  %v3594_v31 = vld [vmem:[#allocation7 + $0x604] ss:$16 sps:$4 sm:$0xff]   ;;  %v4156_v33 = vpack.c.bf16 %v551_v28, %v551_v28  ;;  %v3669_v28 = vld [vmem:[#allocation7 + $0x38c] ss:$16 sps:$4 sm:$0xff]  }
 0x159   :  { %2297 = vmatprep.subr.bf16.mxu1 %v3537_v34  ;;  %2215 = vmatprep.subr.bf16.mxu0 %v3534_v35  ;;  %v3595_v34 = vld [vmem:[#allocation7 + $0x208] ss:$16 sps:$4 sm:$0xff]   ;;  %v3592_v35 = vld [vmem:[#allocation7 + $0x600] ss:$16 sps:$4 sm:$0xff]  }
 0x15c   :  { %2298 = vmatpush1.bf16.msra.mxu1 %v3535_v36  ;;  %2216 = vmatpush1.bf16.msra.mxu0 %v3532_v37  ;;  %v3600_v36 = vld [vmem:[#allocation7 + $0x624] ss:$16 sps:$4 sm:$0xff]   ;;  %v3603_v37 = vld [vmem:[#allocation7 + $0x22c] ss:$16 sps:$4 sm:$0xff]  }
 0x15d   :  { %2299 = vmatprep.subr.bf16.mxu1 %v3543_v38  ;;  %2217 = vmatprep.subr.bf16.mxu0 %v3540_v39  ;;  %v4159_v38 = vpack.c.bf16 %v554_v15, %v554_v15  ;;  %v3601_v39 = vld [vmem:[#allocation7 + $0x228] ss:$16 sps:$4 sm:$0xff]   ;;  %v3675_v15 = vld [vmem:[#allocation7 + $0x3ac] ss:$16 sps:$4 sm:$0xff]  }
 0x160   :  { %2300 = vmatpush1.bf16.msra.mxu1 %v3541_v40  ;;  %2218 = vmatpush1.bf16.msra.mxu0 %v3538_v41  ;;  %v3598_v40 = vld [vmem:[#allocation7 + $0x620] ss:$16 sps:$4 sm:$0xff]   ;;  %v3609_v41 = vld [vmem:[#allocation7 + $0x24c] ss:$16 sps:$4 sm:$0xff]  }
 0x161   :  { %2301 = vmatprep.subr.bf16.mxu1 %v3549_v42  ;;  %2219 = vmatprep.subr.bf16.mxu0 %v3546_v43  ;;  %v3606_v42 = vld [vmem:[#allocation7 + $0x644] ss:$16 sps:$4 sm:$0xff]   ;;  %v3607_v43 = vld [vmem:[#allocation7 + $0x248] ss:$16 sps:$4 sm:$0xff]  }
 0x164   :  { %2302 = vmatpush1.bf16.msra.mxu1 %v3547_v44  ;;  %2220 = vmatpush1.bf16.msra.mxu0 %v3544_v45  ;;  %v3615_v44 = vld [vmem:[#allocation7 + $0x26c] ss:$16 sps:$4 sm:$0xff]   ;;  %v3612_v45 = vld [vmem:[#allocation7 + $0x664] ss:$16 sps:$4 sm:$0xff]  }
 0x165   :  { %2303 = vmatprep.subr.bf16.mxu1 %v3555_v46  ;;  %2221 = vmatprep.subr.bf16.mxu0 %v3552_v47  ;;  %v3613_v46 = vld [vmem:[#allocation7 + $0x268] ss:$16 sps:$4 sm:$0xff]   ;;  %v3610_v47 = vld [vmem:[#allocation7 + $0x660] ss:$16 sps:$4 sm:$0xff]  }
 0x168   :  { %2304 = vmatpush1.bf16.msra.mxu1 %v3553_v48  ;;  %2222 = vmatpush1.bf16.msra.mxu0 %v3550_v49  ;;  %v3618_v48 = vld [vmem:[#allocation7 + $0x684] ss:$16 sps:$4 sm:$0xff]   ;;  %v3619_v49 = vld [vmem:[#allocation7 + $0x288] ss:$16 sps:$4 sm:$0xff]  }
 0x169   :  { %2305 = vmatprep.subr.bf16.mxu1 %v3561_v50  ;;  %2223 = vmatprep.subr.bf16.mxu0 %v3558_v51  ;;  %v3616_v50 = vld [vmem:[#allocation7 + $0x680] ss:$16 sps:$4 sm:$0xff]   ;;  %v3627_v51 = vld [vmem:[#allocation7 + $0x2ac] ss:$16 sps:$4 sm:$0xff]  }
 0x16c   :  { %2306 = vmatpush1.bf16.msra.mxu1 %v3559_v53  ;;  %2224 = vmatpush1.bf16.msra.mxu0 %v3556_v54  ;;  %v3624_v53 = vld [vmem:[#allocation7 + $0x6a4] ss:$16 sps:$4 sm:$0xff]   ;;  %v3625_v54 = vld [vmem:[#allocation7 + $0x2a8] ss:$16 sps:$4 sm:$0xff]  }
 0x16d   :  { %2307 = vmatprep.subr.bf16.mxu1 %v3567_v57  ;;  %2225 = vmatprep.subr.bf16.mxu0 %v3564_v58  ;;  %v3622_v57 = vld [vmem:[#allocation7 + $0x6a0] ss:$16 sps:$4 sm:$0xff]   ;;  %v3633_v58 = vld [vmem:[#allocation7 + $0x2cc] ss:$16 sps:$4 sm:$0xff]  }
 0x170   :  { %2308 = vmatpush1.bf16.msra.mxu1 %v3565_v59  ;;  %2226 = vmatpush1.bf16.msra.mxu0 %v3562_v61  ;;  %v3630_v59 = vld [vmem:[#allocation7 + $0x6c4] ss:$16 sps:$4 sm:$0xff]   ;;  %v3628_v61 = vld [vmem:[#allocation7 + $0x6c0] ss:$16 sps:$4 sm:$0xff]  }
 0x171   :  { %2309 = vmatprep.subr.bf16.mxu1 %v3573_v62  ;;  %2227 = vmatprep.subr.bf16.mxu0 %v3570_v63  ;;  %v3639_v62 = vld [vmem:[#allocation7 + $0x2ec] ss:$16 sps:$4 sm:$0xff]   ;;  %v3636_v63 = vld [vmem:[#allocation7 + $0x6e4] ss:$16 sps:$4 sm:$0xff]  }
 0x174   :  { %2310 = vmatpush1.bf16.msra.mxu1 %v3571_v2  ;;  %2228 = vmatpush1.bf16.msra.mxu0 %v3568_v4  ;;  %v3634_v2 = vld [vmem:[#allocation7 + $0x6e0] ss:$16 sps:$4 sm:$0xff]   ;;  %v3642_v4 = vld [vmem:[#allocation7 + $0x704] ss:$16 sps:$4 sm:$0xff]  }
 0x175   :  { %2311 = vmatprep.subr.bf16.mxu1 %v3579_v5  ;;  %2229 = vmatprep.subr.bf16.mxu0 %v3576_v6  ;;  %v3643_v5 = vld [vmem:[#allocation7 + $0x308] ss:$16 sps:$4 sm:$0xff]   ;;  %v3640_v6 = vld [vmem:[#allocation7 + $0x700] ss:$16 sps:$4 sm:$0xff]  }
 0x178   :  { %2312 = vmatpush1.bf16.msra.mxu1 %v3577_v9  ;;  %2230 = vmatpush1.bf16.msra.mxu0 %v3574_v11  ;;  %v3648_v9 = vld [vmem:[#allocation7 + $0x724] ss:$16 sps:$4 sm:$0xff]   ;;  %v3646_v11 = vld [vmem:[#allocation7 + $0x720] ss:$16 sps:$4 sm:$0xff]  }
 0x179   :  { %2313 = vmatprep.subr.bf16.mxu1 %v3585_v12  ;;  %2231 = vmatprep.subr.bf16.mxu0 %v3582_v13  ;;  %v3657_v12 = vld [vmem:[#allocation7 + $0x34c] ss:$16 sps:$4 sm:$0xff]   ;;  %v3654_v13 = vld [vmem:[#allocation7 + $0x744] ss:$16 sps:$4 sm:$0xff]  }
 0x17c   :  { %2314 = vmatpush1.bf16.msra.mxu1 %v3583_v17  ;;  %2232 = vmatpush1.bf16.msra.mxu0 %v3580_v18  ;;  %v3663_v17 = vld [vmem:[#allocation7 + $0x36c] ss:$16 sps:$4 sm:$0xff]   ;;  %v3660_v18 = vld [vmem:[#allocation7 + $0x764] ss:$16 sps:$4 sm:$0xff]  }
 0x17d   :  { %2315 = vmatprep.subr.bf16.mxu1 %v3591_v19  ;;  %2233 = vmatprep.subr.bf16.mxu0 %v3588_v20  ;;  %v3661_v19 = vld [vmem:[#allocation7 + $0x368] ss:$16 sps:$4 sm:$0xff]   ;;  %v157_v20 = vsub.s32 6, %v4104_v22 }
 0x17e   :  { %v2943_v22 = vld [vmem:[%s4211_s7] sm:$0x3] }
 0x180   :  { %2316 = vmatpush1.bf16.msra.mxu1 %v3589_v8  ;;  %2234 = vmatpush1.bf16.msra.mxu0 %v3586_v29  ;;  %v3666_v8 = vld [vmem:[#allocation7 + $0x784] ss:$16 sps:$4 sm:$0xff]   ;;  %v3667_v29 = vld [vmem:[#allocation7 + $0x388] ss:$16 sps:$4 sm:$0xff]  }
 0x181   :  { %2326 = vmatprep.subr.bf16.mxu1 %v3597_v30  ;;  %2244 = vmatprep.subr.bf16.mxu0 %v3594_v31  ;;  %v158_v30 = vrot.slane %v4112_v24, %v157_v20  ;;  %v3664_v31 = vld [vmem:[#allocation7 + $0x780] ss:$16 sps:$4 sm:$0xff]   ;;  %v3810_v20 = vld [vmem:[#allocation8 + $0x84] ss:$8 sps:$4 sm:$0xff]  }
 0x182   :  { %v3676_v24 = vld [vmem:[#allocation7 + $0x7c0] ss:$16 sps:$4 sm:$0xff]  }
 0x183   :  { %2318 = vmatmul.mubr.bf16.vlgmr.msra.gmra.mrb[12].mxu1 %v4132_v55  ;;  %2236 = vmatmul.mubr.bf16.vlgmr.msra.gmra.mrb[8].mxu0 %v4156_v33  ;;  %v3604_v55 = vld [vmem:[#allocation7 + $0x640] ss:$16 sps:$4 sm:$0xff]  }
 0x184   :  { %2327 = vmatpush1.bf16.msra.mxu1 %v3595_v34  ;;  %2245 = vmatpush1.bf16.msra.mxu0 %v3592_v35  ;;  %v3672_v34 = vld [vmem:[#allocation7 + $0x7a4] ss:$16 sps:$4 sm:$0xff]   ;;  %v3673_v35 = vld [vmem:[#allocation7 + $0x3a8] ss:$16 sps:$4 sm:$0xff]  }
 0x185   :  { %2358 = vmatprep.mubr.bf16.mxu1 %v4134_v56  ;;  %2246 = vmatprep.subr.bf16.mxu0 %v3600_v36  ;;  %v3621_v56 = vld [vmem:[#allocation7 + $0x28c] ss:$16 sps:$4 sm:$0xff]   ;;  %v533_v36 = vadd.f32 %v4143_v14, %v158_v30  ;;  %v3682_v14 = vld [vmem:[#allocation7 + $0x7e0] ss:$16 sps:$4 sm:$0xff]  }
 0x186   :  { %2328 = vmatprep.subr.bf16.mxu1 %v3603_v37  ;;  %2276 = vmatprep.mubr.bf16.mxu0 %v4159_v38  ;;  %v3670_v37 = vld [vmem:[#allocation7 + $0x7a0] ss:$16 sps:$4 sm:$0xff]   ;;  %v3720_v30 = vld [vmem:[#allocation7 + $0x54c] ss:$16 sps:$4 sm:$0xff]  }
 0x188   :  { %2329 = vmatpush1.bf16.msra.mxu1 %v3601_v39  ;;  %2247 = vmatpush1.bf16.msra.mxu0 %v3598_v40  ;;  %v3681_v39 = vld [vmem:[#allocation7 + $0x3cc] ss:$16 sps:$4 sm:$0xff]   ;;  %v3678_v40 = vld [vmem:[#allocation7 + $0x7c4] ss:$16 sps:$4 sm:$0xff]  }
 0x189   :  { %2330 = vmatprep.subr.bf16.mxu1 %v3609_v41  ;;  %2248 = vmatprep.subr.bf16.mxu0 %v3606_v42  ;;  %v545_v41 = vmul.f32 0.2, %v533_v36  ;;  %v3679_v42 = vld [vmem:[#allocation7 + $0x3c8] ss:$16 sps:$4 sm:$0xff]  }
 0x18c   :  { %2331 = vmatpush1.bf16.msra.mxu1 %v3607_v43  ;;  %2249 = vmatpush1.bf16.msra.mxu0 %v3604_v55  ;;  %v3687_v43 = vld [vmem:[#allocation7 + $0x3ec] ss:$16 sps:$4 sm:$0xff]   ;;  %v3684_v55 = vld [vmem:[#allocation7 + $0x7e4] ss:$16 sps:$4 sm:$0xff]  }
 0x18d   :  { %2332 = vmatprep.subr.bf16.mxu1 %v3615_v44  ;;  %2250 = vmatprep.subr.bf16.mxu0 %v3612_v45  ;;  %v553_v44 = vmax.f32 %v533_v36, %v545_v41  ;;  %v3685_v45 = vld [vmem:[#allocation7 + $0x3e8] ss:$16 sps:$4 sm:$0xff]  }
 0x18e   :  { %v3814_v36 = vld [vmem:[#allocation8 + $0xa0] ss:$8 sps:$4 sm:$0xff]   ;;  %v3817_v41 = vld [vmem:[#allocation8 + $0xb0] ss:$8 sps:$4 sm:$0xff]  }
 0x190   :  { %2333 = vmatpush1.bf16.msra.mxu1 %v3613_v46  ;;  %2251 = vmatpush1.bf16.msra.mxu0 %v3610_v47  ;;  %v3690_v46 = vld [vmem:[#allocation7 + $0x40c] ss:$16 sps:$4 sm:$0xff]   ;;  %v4167_v47 = vpack.c.bf16 %v553_v44, %v553_v44  ;;  %v3727_v44 = vld [vmem:[#allocation7 + $0x5a8] ss:$16 sps:$4 sm:$0xff]  }
 0x191   :  { %2334 = vmatprep.subr.bf16.mxu1 %v3621_v56  ;;  %2252 = vmatprep.subr.bf16.mxu0 %v3618_v48  ;;  %v3688_v56 = vld [vmem:[#allocation7 + $0x408] ss:$16 sps:$4 sm:$0xff]   ;;  %v3693_v48 = vld [vmem:[#allocation7 + $0x42c] ss:$16 sps:$4 sm:$0xff]  }
 0x194   :  { %2335 = vmatpush1.bf16.msra.mxu1 %v3619_v49  ;;  %2253 = vmatpush1.bf16.msra.mxu0 %v3616_v50  ;;  %v3784_v49 = vld [vmem:[#allocation8] ss:$8 sps:$4 sm:$0xff]   ;;  %v3786_v50 = vld [vmem:[#allocation8 + $0x4] ss:$8 sps:$4 sm:$0xff]  }
 0x195   :  { %2336 = vmatprep.subr.bf16.mxu1 %v3627_v51  ;;  %2254 = vmatprep.subr.bf16.mxu0 %v3624_v53  ;;  %v3691_v51 = vld [vmem:[#allocation7 + $0x428] ss:$16 sps:$4 sm:$0xff]   ;;  %v3789_v53 = vld [vmem:[#allocation8 + $0x14] ss:$8 sps:$4 sm:$0xff]  }
 0x198   :  { %2337 = vmatpush1.bf16.msra.mxu1 %v3625_v54  ;;  %2255 = vmatpush1.bf16.msra.mxu0 %v3622_v57  ;;  %v3696_v54 = vld [vmem:[#allocation7 + $0x44c] ss:$16 sps:$4 sm:$0xff]   ;;  %v3787_v57 = vld [vmem:[#allocation8 + $0x10] ss:$8 sps:$4 sm:$0xff]  }
 0x199   :  { %2338 = vmatprep.subr.bf16.mxu1 %v3633_v58  ;;  %2256 = vmatprep.subr.bf16.mxu0 %v3630_v59  ;;  %v3694_v58 = vld [vmem:[#allocation7 + $0x448] ss:$16 sps:$4 sm:$0xff]   ;;  %v3792_v59 = vld [vmem:[#allocation8 + $0x24] ss:$8 sps:$4 sm:$0xff]  }
 0x19c   :  { %2339 = vmatpush1.bf16.msra.mxu1 %v3631_v60  ;;  %2257 = vmatpush1.bf16.msra.mxu0 %v3628_v61  ;;  %v3790_v60 = vld [vmem:[#allocation8 + $0x20] ss:$8 sps:$4 sm:$0xff]  }
 0x19d   :  { %2340 = vmatprep.subr.bf16.mxu1 %v3639_v62  ;;  %2258 = vmatprep.subr.bf16.mxu0 %v3636_v63  ;;  %v3697_v61 = vld [vmem:[#allocation7 + $0x468] ss:$16 sps:$4 sm:$0xff]   ;;  %v3795_v62 = vld [vmem:[#allocation8 + $0x34] ss:$8 sps:$4 sm:$0xff]  }
 0x19e   :  { %v3702_v63 = vld [vmem:[#allocation7 + $0x48c] ss:$16 sps:$4 sm:$0xff]  }
 0x1a0   :  { %2341 = vmatpush1.bf16.msra.mxu1 %v3637_v0  ;;  %2259 = vmatpush1.bf16.msra.mxu0 %v3634_v2  ;;  %v3700_v0 = vld [vmem:[#allocation7 + $0x488] ss:$16 sps:$4 sm:$0xff]   ;;  %v3798_v2 = vld [vmem:[#allocation8 + $0x44] ss:$8 sps:$4 sm:$0xff]  }
 0x1a1   :  { %2342 = vmatprep.subr.bf16.mxu1 %v3645_v3  ;;  %2260 = vmatprep.subr.bf16.mxu0 %v3642_v4  ;;  %v3705_v3 = vld [vmem:[#allocation7 + $0x4ac] ss:$16 sps:$4 sm:$0xff]   ;;  %v3796_v4 = vld [vmem:[#allocation8 + $0x40] ss:$8 sps:$4 sm:$0xff]  }
 0x1a4   :  { %2343 = vmatpush1.bf16.msra.mxu1 %v3643_v5  ;;  %2261 = vmatpush1.bf16.msra.mxu0 %v3640_v6  ;;  %v3703_v5 = vld [vmem:[#allocation7 + $0x4a8] ss:$16 sps:$4 sm:$0xff]   ;;  %v3801_v6 = vld [vmem:[#allocation8 + $0x54] ss:$8 sps:$4 sm:$0xff]  }
 0x1a5   :  { %2344 = vmatprep.subr.bf16.mxu1 %v3651_v7  ;;  %2262 = vmatprep.subr.bf16.mxu0 %v3648_v9  ;;  %v3708_v7 = vld [vmem:[#allocation7 + $0x4cc] ss:$16 sps:$4 sm:$0xff]   ;;  %v3799_v9 = vld [vmem:[#allocation8 + $0x50] ss:$8 sps:$4 sm:$0xff]  }
 0x1a8   :  { %2345 = vmatpush1.bf16.msra.mxu1 %v3649_v10  ;;  %2263 = vmatpush1.bf16.msra.mxu0 %v3646_v11  ;;  %v3706_v10 = vld [vmem:[#allocation7 + $0x4c8] ss:$16 sps:$4 sm:$0xff]   ;;  %v3804_v11 = vld [vmem:[#allocation8 + $0x64] ss:$8 sps:$4 sm:$0xff]  }
 0x1a9   :  { %2346 = vmatprep.subr.bf16.mxu1 %v3657_v12  ;;  %2264 = vmatprep.subr.bf16.mxu0 %v3654_v13  ;;  %v3711_v12 = vld [vmem:[#allocation7 + $0x4ec] ss:$16 sps:$4 sm:$0xff]   ;;  %v3802_v13 = vld [vmem:[#allocation8 + $0x60] ss:$8 sps:$4 sm:$0xff]  }
 0x1ac   :  { %2347 = vmatpush1.bf16.msra.mxu1 %v3655_v1  ;;  %2265 = vmatpush1.bf16.msra.mxu0 %v3652_v16  ;;  %v3709_v1 = vld [vmem:[#allocation7 + $0x4e8] ss:$16 sps:$4 sm:$0xff]   ;;  %v3807_v16 = vld [vmem:[#allocation8 + $0x74] ss:$8 sps:$4 sm:$0xff]  }
 0x1ad   :  { %2348 = vmatprep.subr.bf16.mxu1 %v3663_v17  ;;  %2266 = vmatprep.subr.bf16.mxu0 %v3660_v18  ;;  %v3714_v17 = vld [vmem:[#allocation7 + $0x50c] ss:$16 sps:$4 sm:$0xff]   ;;  %v3805_v18 = vld [vmem:[#allocation8 + $0x70] ss:$8 sps:$4 sm:$0xff]  }
 0x1b0   :  { %2349 = vmatpush1.bf16.msra.mxu1 %v3661_v19  ;;  %2267 = vmatpush1.bf16.msra.mxu0 %v3658_v21  ;;  %v3712_v19 = vld [vmem:[#allocation7 + $0x508] ss:$16 sps:$4 sm:$0xff]   ;;  %v3717_v21 = vld [vmem:[#allocation7 + $0x52c] ss:$16 sps:$4 sm:$0xff]  }
 0x1b1   :  { %2350 = vmatprep.subr.bf16.mxu1 %v3669_v28  ;;  %2268 = vmatprep.subr.bf16.mxu0 %v3666_v8  ;;  %v3808_v28 = vld [vmem:[#allocation8 + $0x80] ss:$8 sps:$4 sm:$0xff]  }
 0x1b2   :  { %v3715_v8 = vld [vmem:[#allocation7 + $0x528] ss:$16 sps:$4 sm:$0xff]  }
 0x1b4   :  { %2351 = vmatpush1.bf16.msra.mxu1 %v3667_v29  ;;  %2269 = vmatpush1.bf16.msra.mxu0 %v3664_v31  ;;  %v3813_v29 = vld [vmem:[#allocation8 + $0x94] ss:$8 sps:$4 sm:$0xff]   ;;  %v3811_v31 = vld [vmem:[#allocation8 + $0x90] ss:$8 sps:$4 sm:$0xff]  }
 0x1b5   :  { %2352 = vmatprep.subr.bf16.mxu1 %v3675_v15  ;;  %2270 = vmatprep.subr.bf16.mxu0 %v3672_v34  ;;  %v3718_v15 = vld [vmem:[#allocation7 + $0x548] ss:$16 sps:$4 sm:$0xff]   ;;  %v3816_v34 = vld [vmem:[#allocation8 + $0xa4] ss:$8 sps:$4 sm:$0xff]  }
 0x1b8   :  { %2353 = vmatpush1.bf16.msra.mxu1 %v3673_v35  ;;  %2271 = vmatpush1.bf16.msra.mxu0 %v3670_v37  ;;  %v3723_v35 = vld [vmem:[#allocation7 + $0x56c] ss:$16 sps:$4 sm:$0xff]   ;;  %v3721_v37 = vld [vmem:[#allocation7 + $0x568] ss:$16 sps:$4 sm:$0xff]  }
 0x1b9   :  { %2354 = vmatprep.subr.bf16.mxu1 %v3681_v39  ;;  %2272 = vmatprep.subr.bf16.mxu0 %v3678_v40  ;;  %v3819_v39 = vld [vmem:[#allocation8 + $0xb4] ss:$8 sps:$4 sm:$0xff]  }
 0x1ba   :  { %v3726_v40 = vld [vmem:[#allocation7 + $0x58c] ss:$16 sps:$4 sm:$0xff]  }
 0x1bc   :  { %2355 = vmatpush1.bf16.msra.mxu1 %v3679_v42  ;;  %2273 = vmatpush1.bf16.msra.mxu0 %v3676_v24  ;;  %v3724_v42 = vld [vmem:[#allocation7 + $0x588] ss:$16 sps:$4 sm:$0xff]   ;;  %v3822_v24 = vld [vmem:[#allocation8 + $0xc4] ss:$8 sps:$4 sm:$0xff]  }
 0x1bd   :  { %2356 = vmatprep.subr.bf16.mxu1 %v3687_v43  ;;  %2274 = vmatprep.subr.bf16.mxu0 %v3684_v55  ;;  %v3729_v43 = vld [vmem:[#allocation7 + $0x5ac] ss:$16 sps:$4 sm:$0xff]   ;;  %v3820_v55 = vld [vmem:[#allocation8 + $0xc0] ss:$8 sps:$4 sm:$0xff]  }
 0x1c0   :  { %2357 = vmatpush1.bf16.msra.mxu1 %v3685_v45  ;;  %2275 = vmatpush1.bf16.msra.mxu0 %v3682_v14  ;;  %v3825_v45 = vld [vmem:[#allocation8 + $0xd4] ss:$8 sps:$4 sm:$0xff]  }
 0x1c1   :  { %2367 = vmatprep.subr.bf16.mxu1 %v3690_v46  ;;  %2857 = vmatprep.subr.bf16.mxu0 %v3786_v50  ;;  %v3732_v14 = vld [vmem:[#allocation7 + $0x5cc] ss:$16 sps:$4 sm:$0xff]   ;;  %v3823_v46 = vld [vmem:[#allocation8 + $0xd0] ss:$8 sps:$4 sm:$0xff]  }
 0x1c2   :  { %v3738_v50 = vld [vmem:[#allocation7 + $0x60c] ss:$16 sps:$4 sm:$0xff]  }
 0x1c3   :  { %2359 = vmatmul.mubr.bf16.vlgmr.msra.gmra.mrb[12].mxu1 %v4130_v52  ;;  %2277 = vmatmul.mubr.bf16.vlgmr.msra.gmra.mrb[8].mxu0 %v4167_v47  ;;  %v3699_v52 = vld [vmem:[#allocation7 + $0x46c] ss:$16 sps:$4 sm:$0xff]  }
 0x1c4   :  { %2368 = vmatpush1.bf16.msra.mxu1 %v3688_v56  ;;  %2399 = vmatprep.mubr.bf16.mxu1 %v4147_v32  ;;  %v3793_v32 = vld [vmem:[#allocation8 + $0x30] ss:$8 sps:$4 sm:$0xff]  }
 0x1c5   :  { %2369 = vmatprep.subr.bf16.mxu1 %v3693_v48  ;;  %2858 = vmatpush1.bf16.msra.mxu0 %v3784_v49  ;;  %v3730_v56 = vld [vmem:[#allocation7 + $0x5c8] ss:$16 sps:$4 sm:$0xff]   ;;  %v3735_v48 = vld [vmem:[#allocation7 + $0x5ec] ss:$16 sps:$4 sm:$0xff]  }
 0x1c6   :  { %2859 = vmatprep.subr.bf16.mxu0 %v3789_v53  ;;  %v3733_v49 = vld [vmem:[#allocation7 + $0x5e8] ss:$16 sps:$4 sm:$0xff]   ;;  %v3741_v53 = vld [vmem:[#allocation7 + $0x62c] ss:$16 sps:$4 sm:$0xff]  }
 0x1c8   :  { %2370 = vmatpush1.bf16.msra.mxu1 %v3691_v51  ;;  %v3736_v51 = vld [vmem:[#allocation7 + $0x608] ss:$16 sps:$4 sm:$0xff]  }
 0x1c9   :  { %2371 = vmatprep.subr.bf16.mxu1 %v3696_v54  ;;  %2860 = vmatpush1.bf16.msra.mxu0 %v3787_v57  ;;  %v3739_v54 = vld [vmem:[#allocation7 + $0x628] ss:$16 sps:$4 sm:$0xff]   ;;  %v3744_v57 = vld [vmem:[#allocation7 + $0x64c] ss:$16 sps:$4 sm:$0xff]  }
 0x1ca   :  { %2861 = vmatprep.subr.bf16.mxu0 %v3792_v59  ;;  %v3747_v59 = vld [vmem:[#allocation7 + $0x66c] ss:$16 sps:$4 sm:$0xff]  }
 0x1cc   :  { %2372 = vmatpush1.bf16.msra.mxu1 %v3694_v58  ;;  %v3742_v58 = vld [vmem:[#allocation7 + $0x648] ss:$16 sps:$4 sm:$0xff]  }
 0x1cd   :  { %2373 = vmatprep.subr.bf16.mxu1 %v3699_v52  ;;  %2862 = vmatpush1.bf16.msra.mxu0 %v3790_v60  ;;  %v3745_v52 = vld [vmem:[#allocation7 + $0x668] ss:$16 sps:$4 sm:$0xff]   ;;  %v3750_v60 = vld [vmem:[#allocation7 + $0x68c] ss:$16 sps:$4 sm:$0xff]  }
 0x1ce   :  { %2863 = vmatprep.subr.bf16.mxu0 %v3795_v62  ;;  %v3753_v62 = vld [vmem:[#allocation7 + $0x6ac] ss:$16 sps:$4 sm:$0xff]  }
 0x1d0   :  { %2374 = vmatpush1.bf16.msra.mxu1 %v3697_v61  ;;  %v3748_v61 = vld [vmem:[#allocation7 + $0x688] ss:$16 sps:$4 sm:$0xff]  }
 0x1d1   :  { %2375 = vmatprep.subr.bf16.mxu1 %v3702_v63  ;;  %2864 = vmatpush1.bf16.msra.mxu0 %v3793_v32  ;;  %v3756_v63 = vld [vmem:[#allocation7 + $0x6cc] ss:$16 sps:$4 sm:$0xff]  }
 0x1d2   :  { %2865 = vmatprep.subr.bf16.mxu0 %v3798_v2  ;;  %v3754_v2 = vld [vmem:[#allocation7 + $0x6c8] ss:$16 sps:$4 sm:$0xff]  }
 0x1d4   :  { %2376 = vmatpush1.bf16.msra.mxu1 %v3700_v0 }
 0x1d5   :  { %2377 = vmatprep.subr.bf16.mxu1 %v3705_v3  ;;  %2866 = vmatpush1.bf16.msra.mxu0 %v3796_v4  ;;  %v3828_v3 = vld [vmem:[#allocation8 + $0xe4] ss:$8 sps:$4 sm:$0xff]  }
 0x1d6   :  { %2867 = vmatprep.subr.bf16.mxu0 %v3801_v6  ;;  %v3826_v6 = vld [vmem:[#allocation8 + $0xe0] ss:$8 sps:$4 sm:$0xff]  }
 0x1d8   :  { %2378 = vmatpush1.bf16.msra.mxu1 %v3703_v5  ;;  %v3759_v5 = vld [vmem:[#allocation7 + $0x6ec] ss:$16 sps:$4 sm:$0xff]  }
 0x1d9   :  { %2379 = vmatprep.subr.bf16.mxu1 %v3708_v7  ;;  %2868 = vmatpush1.bf16.msra.mxu0 %v3799_v9  ;;  %v3757_v7 = vld [vmem:[#allocation7 + $0x6e8] ss:$16 sps:$4 sm:$0xff]   ;;  %v3831_v9 = vld [vmem:[#allocation8 + $0xf4] ss:$8 sps:$4 sm:$0xff]  }
 0x1da   :  { %2869 = vmatprep.subr.bf16.mxu0 %v3804_v11  ;;  %v3829_v11 = vld [vmem:[#allocation8 + $0xf0] ss:$8 sps:$4 sm:$0xff]  }
 0x1dc   :  { %2380 = vmatpush1.bf16.msra.mxu1 %v3706_v10  ;;  %v3762_v10 = vld [vmem:[#allocation7 + $0x70c] ss:$16 sps:$4 sm:$0xff]  }
 0x1dd   :  { %2381 = vmatprep.subr.bf16.mxu1 %v3711_v12  ;;  %2870 = vmatpush1.bf16.msra.mxu0 %v3802_v13  ;;  %v3760_v12 = vld [vmem:[#allocation7 + $0x708] ss:$16 sps:$4 sm:$0xff]   ;;  %v3765_v13 = vld [vmem:[#allocation7 + $0x72c] ss:$16 sps:$4 sm:$0xff]  }
 0x1de   :  { %2871 = vmatprep.subr.bf16.mxu0 %v3807_v16  ;;  %v3763_v16 = vld [vmem:[#allocation7 + $0x728] ss:$16 sps:$4 sm:$0xff]  }
 0x1e0   :  { %2382 = vmatpush1.bf16.msra.mxu1 %v3709_v1  ;;  %v3834_v1 = vld [vmem:[#allocation8 + $0x104] ss:$8 sps:$4 sm:$0xff]  }
 0x1e1   :  { %2383 = vmatprep.subr.bf16.mxu1 %v3714_v17  ;;  %2872 = vmatpush1.bf16.msra.mxu0 %v3805_v18  ;;  %v3768_v17 = vld [vmem:[#allocation7 + $0x74c] ss:$16 sps:$4 sm:$0xff]   ;;  %v3766_v18 = vld [vmem:[#allocation7 + $0x748] ss:$16 sps:$4 sm:$0xff]  }
 0x1e2   :  { %2873 = vmatprep.subr.bf16.mxu0 %v3810_v20  ;;  %v3769_v20 = vld [vmem:[#allocation7 + $0x768] ss:$16 sps:$4 sm:$0xff]  }
 0x1e4   :  { %2384 = vmatpush1.bf16.msra.mxu1 %v3712_v19  ;;  %v3771_v19 = vld [vmem:[#allocation7 + $0x76c] ss:$16 sps:$4 sm:$0xff]  }
 0x1e5   :  { %2385 = vmatprep.subr.bf16.mxu1 %v3717_v21  ;;  %2874 = vmatpush1.bf16.msra.mxu0 %v3808_v28  ;;  %v3774_v21 = vld [vmem:[#allocation7 + $0x78c] ss:$16 sps:$4 sm:$0xff]   ;;  %v3772_v28 = vld [vmem:[#allocation7 + $0x788] ss:$16 sps:$4 sm:$0xff]  }
 0x1e6   :  { %2875 = vmatprep.subr.bf16.mxu0 %v3813_v29  ;;  %v3775_v29 = vld [vmem:[#allocation7 + $0x7a8] ss:$16 sps:$4 sm:$0xff]  }
 0x1e8   :  { %2386 = vmatpush1.bf16.msra.mxu1 %v3715_v8  ;;  %v3777_v8 = vld [vmem:[#allocation7 + $0x7ac] ss:$16 sps:$4 sm:$0xff]  }
 0x1e9   :  { %2387 = vmatprep.subr.bf16.mxu1 %v3720_v30  ;;  %2876 = vmatpush1.bf16.msra.mxu0 %v3811_v31  ;;  %v3780_v30 = vld [vmem:[#allocation7 + $0x7cc] ss:$16 sps:$4 sm:$0xff]   ;;  %v3778_v31 = vld [vmem:[#allocation7 + $0x7c8] ss:$16 sps:$4 sm:$0xff]  }
 0x1ea   :  { %2877 = vmatprep.subr.bf16.mxu0 %v3816_v34  ;;  %v3781_v34 = vld [vmem:[#allocation7 + $0x7e8] ss:$16 sps:$4 sm:$0xff]  }
 0x1ec   :  { %2388 = vmatpush1.bf16.msra.mxu1 %v3718_v15  ;;  %v3783_v15 = vld [vmem:[#allocation7 + $0x7ec] ss:$16 sps:$4 sm:$0xff]  }
 0x1ed   :  { %2389 = vmatprep.subr.bf16.mxu1 %v3723_v35  ;;  %2878 = vmatpush1.bf16.msra.mxu0 %v3814_v36  ;;  %v4178_v35 = vld [vmem:[%s4208_s4] sm:$0xf] }
 0x1ee   :  { %2879 = vmatprep.subr.bf16.mxu0 %v3819_v39  ;;  %v824_v36 = vrot.slane %v4178_v35, %v4107_v23 }
 0x1f0   :  { %2390 = vmatpush1.bf16.msra.mxu1 %v3721_v37  ;;  %v828_v37 = vrot.slane %v4178_v35, %v4118_v26 }
 0x1f1   :  { %2391 = vmatprep.subr.bf16.mxu1 %v3726_v40  ;;  %2880 = vmatpush1.bf16.msra.mxu0 %v3817_v41 }
 0x1f2   :  { %2881 = vmatprep.subr.bf16.mxu0 %v3822_v24 }
 0x1f4   :  { %2392 = vmatpush1.bf16.msra.mxu1 %v3724_v42 }
 0x1f5   :  { %2393 = vmatprep.subr.bf16.mxu1 %v3729_v43  ;;  %2882 = vmatpush1.bf16.msra.mxu0 %v3820_v55 }
 0x1f6   :  { %2883 = vmatprep.subr.bf16.mxu0 %v3825_v45 }
 0x1f8   :  { %2394 = vmatpush1.bf16.msra.mxu1 %v3727_v44 }
 0x1f9   :  { %2395 = vmatprep.subr.bf16.mxu1 %v3732_v14  ;;  %2884 = vmatpush1.bf16.msra.mxu0 %v3823_v46 }
 0x1fa   :  { %2885 = vmatprep.subr.bf16.mxu0 %v3828_v3  ;;  %v3859_v3 = vld [vmem:[#allocation8 + $0x190] ss:$8 sps:$4 sm:$0xff]  }
 0x1fc   :  { %2396 = vmatpush1.bf16.msra.mxu1 %v3730_v56 }
 0x1fd   :  { %2397 = vmatprep.subr.bf16.mxu1 %v3735_v48  ;;  %2886 = vmatpush1.bf16.msra.mxu0 %v3826_v6  ;;  %v3832_v48 = vld [vmem:[#allocation8 + $0x100] ss:$8 sps:$4 sm:$0xff]   ;;  %v3867_v6 = vld [vmem:[#allocation8 + $0x1b4] ss:$8 sps:$4 sm:$0xff]  }
 0x1fe   :  { %2887 = vmatprep.subr.bf16.mxu0 %v3831_v9  ;;  %v3870_v9 = vld [vmem:[#allocation8 + $0x1c4] ss:$8 sps:$4 sm:$0xff]  }
 0x200   :  { %2398 = vmatpush1.bf16.msra.mxu1 %v3733_v49 }
 0x201   :  { %2408 = vmatprep.subr.bf16.mxu1 %v3738_v50  ;;  %2888 = vmatpush1.bf16.msra.mxu0 %v3829_v11  ;;  %v3837_v50 = vld [vmem:[#allocation8 + $0x114] ss:$8 sps:$4 sm:$0xff]  }
 0x202   :  { %2898 = vmatprep.subr.bf16.mxu0 %v3834_v1  ;;  %v3873_v11 = vld [vmem:[#allocation8 + $0x1d4] ss:$8 sps:$4 sm:$0xff]   ;;  %v3874_v1 = vld [vmem:[#allocation8 + $0x1e0] ss:$8 sps:$4 sm:$0xff]  }
 0x203   :  { %2400 = vmatmul.mubr.bf16.vlgmr.msra.gmra.mrb[12].mxu1 %v4156_v33  ;;  %v3751_v33 = vld [vmem:[#allocation7 + $0x6a8] ss:$16 sps:$4 sm:$0xff]  }
 0x204   :  { %2409 = vmatpush1.bf16.msra.mxu1 %v3736_v51  ;;  %2440 = vmatprep.mubr.bf16.mxu1 %v4159_v38  ;;  %v3835_v51 = vld [vmem:[#allocation8 + $0x110] ss:$8 sps:$4 sm:$0xff]  }
 0x205   :  { %2410 = vmatprep.subr.bf16.mxu1 %v3741_v53  ;;  %v3840_v53 = vld [vmem:[#allocation8 + $0x124] ss:$8 sps:$4 sm:$0xff]  }
 0x208   :  { %2411 = vmatpush1.bf16.msra.mxu1 %v3739_v54  ;;  %v3838_v54 = vld [vmem:[#allocation8 + $0x120] ss:$8 sps:$4 sm:$0xff]  }
 0x209   :  { %2412 = vmatprep.subr.bf16.mxu1 %v3744_v57  ;;  %v3843_v57 = vld [vmem:[#allocation8 + $0x134] ss:$8 sps:$4 sm:$0xff]  }
 0x20c   :  { %2413 = vmatpush1.bf16.msra.mxu1 %v3742_v58  ;;  %v3841_v58 = vld [vmem:[#allocation8 + $0x130] ss:$8 sps:$4 sm:$0xff]  }
 0x20d   :  { %2414 = vmatprep.subr.bf16.mxu1 %v3747_v59  ;;  %v3846_v59 = vld [vmem:[#allocation8 + $0x144] ss:$8 sps:$4 sm:$0xff]  }
 0x210   :  { %2415 = vmatpush1.bf16.msra.mxu1 %v3745_v52  ;;  %v3844_v52 = vld [vmem:[#allocation8 + $0x140] ss:$8 sps:$4 sm:$0xff]  }
 0x211   :  { %2416 = vmatprep.subr.bf16.mxu1 %v3750_v60  ;;  %v3849_v60 = vld [vmem:[#allocation8 + $0x154] ss:$8 sps:$4 sm:$0xff]  }
 0x214   :  { %2417 = vmatpush1.bf16.msra.mxu1 %v3748_v61  ;;  %v3847_v61 = vld [vmem:[#allocation8 + $0x150] ss:$8 sps:$4 sm:$0xff]  }
 0x215   :  { %2418 = vmatprep.subr.bf16.mxu1 %v3753_v62  ;;  %v3852_v62 = vld [vmem:[#allocation8 + $0x164] ss:$8 sps:$4 sm:$0xff]  }
 0x216   :  { %v2155_v38 = vpop.f32.mrb[8].mxu1 }
 0x217   :  { %v2157_v32 = vpop.f32.mrb[9].mxu1  ;;  %v2156_v39 = vadd.f32 %v2155_v38, %v824_v36  ;;  %v3853_v38 = vld [vmem:[#allocation8 + $0x170] ss:$8 sps:$4 sm:$0xff]  }
 0x218   :  { %2419 = vmatpush1.bf16.msra.mxu1 %v3751_v33  ;;  %v2159_v0 = vpop.f32.mrb[10].mxu1  ;;  %v2158_v40 = vadd.f32 %v2157_v32, %v828_v37  ;;  %v3850_v33 = vld [vmem:[#allocation8 + $0x160] ss:$8 sps:$4 sm:$0xff]   ;;  %v3858_v32 = vld [vmem:[#allocation8 + $0x184] ss:$8 sps:$4 sm:$0xff]  }
 0x219   :  { %v2160_v4 = vpop.f32.mrb[11].mxu1  ;;  %2420 = vmatprep.subr.bf16.mxu1 %v3756_v63  ;;  %v3855_v63 = vld [vmem:[#allocation8 + $0x174] ss:$8 sps:$4 sm:$0xff]   ;;  %v3856_v0 = vld [vmem:[#allocation8 + $0x180] ss:$8 sps:$4 sm:$0xff]  }
 0x21a   :  { %v3864_v4 = vld [vmem:[#allocation8 + $0x1a4] ss:$8 sps:$4 sm:$0xff]  }
 0x21c   :  { %2421 = vmatpush1.bf16.msra.mxu1 %v3754_v2  ;;  %v3861_v2 = vld [vmem:[#allocation8 + $0x194] ss:$8 sps:$4 sm:$0xff]  }
 0x21d   :  { %2422 = vmatprep.subr.bf16.mxu1 %v3759_v5  ;;  %v3862_v5 = vld [vmem:[#allocation8 + $0x1a0] ss:$8 sps:$4 sm:$0xff]  }
 0x220   :  { %2423 = vmatpush1.bf16.msra.mxu1 %v3757_v7  ;;  %v3865_v7 = vld [vmem:[#allocation8 + $0x1b0] ss:$8 sps:$4 sm:$0xff]  }
 0x221   :  { %2424 = vmatprep.subr.bf16.mxu1 %v3762_v10  ;;  %v3868_v10 = vld [vmem:[#allocation8 + $0x1c0] ss:$8 sps:$4 sm:$0xff]  }
 0x224   :  { %2425 = vmatpush1.bf16.msra.mxu1 %v3760_v12  ;;  %v3871_v12 = vld [vmem:[#allocation8 + $0x1d0] ss:$8 sps:$4 sm:$0xff]  }
 0x225   :  { %2426 = vmatprep.subr.bf16.mxu1 %v3765_v13  ;;  %v3876_v13 = vld [vmem:[#allocation8 + $0x1e4] ss:$8 sps:$4 sm:$0xff]  }
 0x228   :  { %2427 = vmatpush1.bf16.msra.mxu1 %v3763_v16  ;;  %v3879_v16 = vld [vmem:[#allocation8 + $0x1f4] ss:$8 sps:$4 sm:$0xff]  }
 0x229   :  { %2428 = vmatprep.subr.bf16.mxu1 %v3768_v17  ;;  %v3877_v17 = vld [vmem:[#allocation8 + $0x1f0] ss:$8 sps:$4 sm:$0xff]  }
 0x22c   :  { %2429 = vmatpush1.bf16.msra.mxu1 %v3766_v18  ;;  %v832_v18 = vrot.slane %v4178_v35, %v4115_v25 }
 0x22d   :  { %2430 = vmatprep.subr.bf16.mxu1 %v3771_v19  ;;  %v836_v19 = vrot.slane %v4178_v35, %v145_v27  ;;  %v2525_v27 = vld [vmem:[%s4210_s6] sm:$0x3]  ;;  %v2944_v35 = vunpack.c.l.bf16 %v2943_v22 }
 0x230   :  { %2431 = vmatpush1.bf16.msra.mxu1 %v3769_v20 }
 0x231   :  { %2432 = vmatprep.subr.bf16.mxu1 %v3774_v21 }
 0x234   :  { %2433 = vmatpush1.bf16.msra.mxu1 %v3772_v28 }
 0x235   :  { %2434 = vmatprep.subr.bf16.mxu1 %v3777_v8 }
 0x238   :  { %2435 = vmatpush1.bf16.msra.mxu1 %v3775_v29 }
 0x239   :  { %2436 = vmatprep.subr.bf16.mxu1 %v3780_v30 }
 0x23c   :  { %2437 = vmatpush1.bf16.msra.mxu1 %v3778_v31 }
 0x23d   :  { %2438 = vmatprep.subr.bf16.mxu1 %v3783_v15 }
 0x240   :  { %2439 = vmatpush1.bf16.msra.mxu1 %v3781_v34 }
 0x243   :  { %2441 = vmatmul.mubr.bf16.vlgmr.msra.gmra.mrb[12].mxu1 %v4167_v47 }
 0x296   :  { %v2278_v41 = vpop.f32.mrb[8].mxu0 }
 0x297   :  { %v3358_v42 = vadd.f32 %v2278_v41, %v2156_v39  ;;  %v2280_v24 = vpop.f32.mrb[9].mxu0  ;;  %v2534_v41 = vrot.slane %v2525_v27, %v4118_v26 }
 0x298   :  { %v3360_v43 = vadd.f32 %v2280_v24, %v2158_v40  ;;  %v2282_v55 = vpop.f32.mrb[10].mxu0  ;;  %v2530_v40 = vrot.slane %v2525_v27, %v4107_v23 }
 0x299   :  { %v2449_v44 = vmul.f32 0.2, %v3358_v42  ;;  %v2283_v47 = vpop.f32.mrb[11].mxu0 }
 0x29a   :  { %v2450_v45 = vmul.f32 0.2, %v3360_v43 }
 0x29b   :  { %v2453_v14 = vmax.f32 %v3358_v42, %v2449_v44  ;;  %v2949_v42 = vrot.slane %v2944_v35, %v4107_v23 }
 0x29c   :  { %v2454_v46 = vmax.f32 %v3360_v43, %v2450_v45  ;;  %v2953_v43 = vrot.slane %v2944_v35, %v4115_v25 }
 0x29d   :  { %v2457_v49 = vpack.c.bf16 %v2453_v14, %v2453_v14 }
 0x29e   :  { %v2458_v56 = vpack.c.bf16 %v2454_v46, %v2454_v46 }
 0x2a0   :  { %2889 = vmatprep.mubr.bf16.mxu0 %v2458_v56  ;;  %v2959_v56 = vrot.slane %v2949_v42, %v4107_v23 }
 0x2a1   :  { %2890 = vmatmul.mubr.bf16.vlgmr.msra.gmra.mrb[12].mxu0 %v2457_v49  ;;  %v2963_v49 = vrot.slane %v2953_v43, %v4107_v23 }
 0x2a2   :  { %2899 = vmatpush1.bf16.msra.mxu0 %v3832_v48 }
 0x2a3   :  { %2900 = vmatprep.subr.bf16.mxu0 %v3837_v50 }
 0x2a6   :  { %2901 = vmatpush1.bf16.msra.mxu0 %v3835_v51 }
 0x2a7   :  { %2902 = vmatprep.subr.bf16.mxu0 %v3840_v53 }
 0x2aa   :  { %2903 = vmatpush1.bf16.msra.mxu0 %v3838_v54 }
 0x2ab   :  { %2904 = vmatprep.subr.bf16.mxu0 %v3843_v57  ;;  %v3356_v57 = vld [vmem:[#allocation2] ss:$0 sm:$0xff] }
 0x2ae   :  { %2905 = vmatpush1.bf16.msra.mxu0 %v3841_v58 }
 0x2af   :  { %2906 = vmatprep.subr.bf16.mxu0 %v3846_v59 }
 0x2b2   :  { %2907 = vmatpush1.bf16.msra.mxu0 %v3844_v52 }
 0x2b3   :  { %2908 = vmatprep.subr.bf16.mxu0 %v3849_v60 }
 0x2b6   :  { %2909 = vmatpush1.bf16.msra.mxu0 %v3847_v61 }
 0x2b7   :  { %2910 = vmatprep.subr.bf16.mxu0 %v3852_v62 }
 0x2ba   :  { %2911 = vmatpush1.bf16.msra.mxu0 %v3850_v33 }
 0x2bb   :  { %2912 = vmatprep.subr.bf16.mxu0 %v3855_v63 }
 0x2be   :  { %2913 = vmatpush1.bf16.msra.mxu0 %v3853_v38 }
 0x2bf   :  { %2914 = vmatprep.subr.bf16.mxu0 %v3858_v32 }
 0x2c2   :  { %2915 = vmatpush1.bf16.msra.mxu0 %v3856_v0 }
 0x2c3   :  { %2916 = vmatprep.subr.bf16.mxu0 %v3861_v2 }
 0x2c6   :  { %2917 = vmatpush1.bf16.msra.mxu0 %v3859_v3 }
 0x2c7   :  { %2918 = vmatprep.subr.bf16.mxu0 %v3864_v4 }
 0x2ca   :  { %2919 = vmatpush1.bf16.msra.mxu0 %v3862_v5 }
 0x2cb   :  { %2920 = vmatprep.subr.bf16.mxu0 %v3867_v6 }
 0x2ce   :  { %2921 = vmatpush1.bf16.msra.mxu0 %v3865_v7 }
 0x2cf   :  { %2922 = vmatprep.subr.bf16.mxu0 %v3870_v9 }
 0x2d2   :  { %2923 = vmatpush1.bf16.msra.mxu0 %v3868_v10 }
 0x2d3   :  { %2924 = vmatprep.subr.bf16.mxu0 %v3873_v11 }
 0x2d6   :  { %2925 = vmatpush1.bf16.msra.mxu0 %v3871_v12 }
 0x2d7   :  { %2926 = vmatprep.subr.bf16.mxu0 %v3876_v13 }
 0x2da   :  { %2927 = vmatpush1.bf16.msra.mxu0 %v3874_v1 }
 0x2db   :  { %2928 = vmatprep.subr.bf16.mxu0 %v3879_v16 }
 0x2de   :  { %2929 = vmatpush1.bf16.msra.mxu0 %v3877_v17 }
 0x316   :  { %v2442_v20 = vpop.f32.mrb[12].mxu1 }
 0x317   :  { %v3361_v21 = vadd.f32 %v2442_v20, %v832_v18  ;;  %v2444_v28 = vpop.f32.mrb[13].mxu1 }
 0x318   :  { %v3362_v8 = vadd.f32 %v2444_v28, %v836_v19  ;;  %v2446_v29 = vpop.f32.mrb[14].mxu1 }
 0x319   :  { %v2451_v30 = vmul.f32 0.2, %v3361_v21  ;;  %v2447_v31 = vpop.f32.mrb[15].mxu1 }
 0x31a   :  { %v2452_v15 = vmul.f32 0.2, %v3362_v8 }
 0x31b   :  { %v2455_v34 = vmax.f32 %v3361_v21, %v2451_v30 }
 0x31c   :  { %v2456_v36 = vmax.f32 %v3362_v8, %v2452_v15 }
 0x31d   :  { %v2459_v39 = vpack.c.bf16 %v2455_v34, %v2455_v34 }
 0x31e   :  { %v2460_v37 = vpack.c.bf16 %v2456_v36, %v2456_v36 }
 0x320   :  { %2930 = vmatprep.mubr.bf16.mxu0 %v2460_v37 }
 0x321   :  { %2931 = vmatmul.mubr.bf16.vlgmr.msra.gmra.mrb[12].mxu0 %v2459_v39 }
 0x3f4   :  { %v2932_v24 = vpop.f32.mrb[12].mxu0 }
 0x3f5   :  { %v3363_v55 = vadd.f32 %v2932_v24, %v2530_v40  ;;  %v2934_v44 = vpop.f32.mrb[13].mxu0 }
 0x3f6   :  { %v3364_v47 = vadd.f32 %v2934_v44, %v2534_v41  ;;  %v2936_v45 = vpop.f32.mrb[14].mxu0 }
 0x3f7   :  { %v2939_v14 = vmul.f32 0.2, %v3363_v55  ;;  %v2937_v46 = vpop.f32.mrb[15].mxu0 }
 0x3f8   :  { %v2940_v48 = vmul.f32 0.2, %v3364_v47 }
 0x3f9   :  { %v2941_v50 = vmax.f32 %v3363_v55, %v2939_v14 }
 0x3fa   :  { %v2942_v51 = vmax.f32 %v3364_v47, %v2940_v48 }
 0x3fb   :  { %v2964_v53 = vmul.f32 %v2959_v56, %v2941_v50 }
 0x3fc   :  { %v2965_v26 = vmul.f32 %v2963_v49, %v2942_v51 }
 0x3fe   :  { %v2966_v54 = vadd.f32 %v2965_v26, %v2964_v53 }
 0x400   :  { %2967 = vadd.xlane.f32.xlu0 %v2966_v54 }
 0x48d   :  { %v2968_v58 = vpop.xlane.xlu0 %2967 }
 0x48e   :  { %v2976_v25 = vadd.f32 %v3356_v57, %v2968_v58 }
 0x490   :  { %v2977_v59 = vsub.f32 0.0, %v2976_v25 }
 0x492   :  { %v2978_v52 = vmul.f32 1.442695, %v2977_v59 }
 0x494   :  { %3880 = vpow2.f32 %v2978_v52 }
 0x49e   :  { %v3881_v60 = vpop.eup %3880 }
 0x49f   :  { %v2980_v61 = vadd.f32 1.0, %v3881_v60 }
 0x4a1   :  { %3882 = vrcp.f32 %v2980_v61 }
 0x4ab   :  { %v3883_v62 = vpop.eup %3882 }
 0x4ac   :  { %2984 = vst.msk [vmem:[%s4213_s9] sm:$0xff] %vm2983_vm1, %v3883_v62 }
 0x4ad   :  { %2989 = vsyncpa [#allocation4], 1 }
 0x4ae   :  { %2990 = vsyncpa [#allocation6], 1 }
 0x4af   :  { %2991 = vsyncpa [#allocation9], 1 }

</bundles_post_ra>
